<compile_context>
chip_gen: v5e
topology: v5e:2x2
jax: 0.10.0
libtpu: 0.0.40
codegen_flags: <defaults>
</compile_context>

<pallas_src>
import jax
import jax.numpy as jnp
from jax.experimental import pallas as pl
from jax.experimental.pallas import tpu as pltpu


# ---------------------------------------------------------------------------
# Pallas kernel
# ---------------------------------------------------------------------------
def char_lstm_kernel(x_ref,                       # (S, B, E) embedded sequence
                     hinit_ref, cinit_ref,        # (2, B, H) initial state
                     wih0_ref, whh0_ref, b0_ref,  # layer 0: (E,4H), (H,4H), (1,4H)
                     wcat1_ref, b1_ref,           # layer 1 fused: (2H,4H), (1,4H)
                     wfc_ref, bfc_ref,            # fc: (H,O), (1,O)
                     pred_ref, hn_ref, cn_ref,    # outputs
                     xg_ref, h1s_ref):            # VMEM scratch: (S,B,4H), (S,B,H)
    S, B, E = x_ref.shape
    H = whh0_ref.shape[0]
    O = wfc_ref.shape[1]

    # ---- hoisted layer-0 input projection: one batched, lane-dense matmul ----
    x_all = x_ref[...].reshape(S * B, E)                              # (S*B, E)
    xg = (jnp.dot(x_all, wih0_ref[...], preferred_element_type=jnp.float32)
          + b0_ref[...])                                              # (S*B, 4H)
    xg_ref[...] = xg.reshape(S, B, 4 * H)

    # Load weights once; pre-broadcast bias once (no per-step broadcast_in_dim).
    whh0 = whh0_ref[...]
    wcat1 = wcat1_ref[...]
    b1 = jnp.broadcast_to(b1_ref[...], (B, 4 * H))

    def gates_to_hc(gates, c):
        i = jax.nn.sigmoid(gates[:, 0 * H:1 * H])
        f = jax.nn.sigmoid(gates[:, 1 * H:2 * H])
        g = jnp.tanh(gates[:, 2 * H:3 * H])
        o = jax.nn.sigmoid(gates[:, 3 * H:4 * H])
        c_new = f * c + i * g
        h_new = o * jnp.tanh(c_new)
        return h_new, c_new

    def step(t, carry):
        h0, c0, h1, c1 = carry
        # layer 0: input gates precomputed; only the recurrent matmul here.
        gates0 = xg_ref[t] + jnp.dot(h0, whh0,
                                     preferred_element_type=jnp.float32)
        h0, c0 = gates_to_hc(gates0, c0)
        # layer 1: single fused dot on [h0_t, h1_{t-1}] @ [Wih1; Whh1].
        xh1 = jnp.concatenate([h0, h1], axis=-1)                      # (B, 2H)
        gates1 = jnp.dot(xh1, wcat1,
                         preferred_element_type=jnp.float32) + b1
        h1, c1 = gates_to_hc(gates1, c1)
        h1s_ref[t] = h1
        return (h0, c0, h1, c1)

    carry0 = (hinit_ref[0], cinit_ref[0], hinit_ref[1], cinit_ref[1])
    h0, c0, h1, c1 = jax.lax.fori_loop(0, S, step, carry0, unroll=True)

    # ---- hoisted FC: one (S*B, H) @ (H, O) matmul + single pred store ----
    h1_all = h1s_ref[...].reshape(S * B, H)
    pred = (jnp.dot(h1_all, wfc_ref[...], preferred_element_type=jnp.float32)
            + bfc_ref[...])
    pred_ref[...] = pred.reshape(S, B, O).astype(pred_ref.dtype)

    hn_ref[0] = h0
    hn_ref[1] = h1
    cn_ref[0] = c0
    cn_ref[1] = c1


# ---------------------------------------------------------------------------
# Wrapper
# ---------------------------------------------------------------------------
@jax.jit
def char_lstm_forward(inputs, params, hidden_and_cell=None):
    """inputs: (S, B) int32.  Returns (prediction (S,B,O), (h_n, c_n))."""
    emb_table = params["embedding"]                    # (V, E)
    # TODO(synk): embedding gather kept as JAX glue (data-dependent row gather
    # has no clean rectangular BlockSpec equivalent at these tiny sizes).
    embedded = jnp.take(emb_table, inputs, axis=0)     # (S, B, E)
    S, B, E = embedded.shape
    H = params["whh0"].shape[0]
    O = params["wfc"].shape[1]

    if hidden_and_cell is None:
        h_init = jnp.zeros((2, B, H), jnp.float32)
        c_init = jnp.zeros((2, B, H), jnp.float32)
    else:
        h_init, c_init = hidden_and_cell
        h_init = h_init.astype(jnp.float32)
        c_init = c_init.astype(jnp.float32)

    # Fuse layer-1 ih/hh weights along the contraction dim: (2H, 4H).
    wcat1 = jnp.concatenate([params["wih1"], params["whh1"]], axis=0)

    vmem = lambda: pl.BlockSpec(memory_space=pltpu.MemorySpace.VMEM)

    pred, hn, cn = pl.pallas_call(
        char_lstm_kernel,
        out_shape=(
            jax.ShapeDtypeStruct((S, B, O), jnp.float32),
            jax.ShapeDtypeStruct((2, B, H), jnp.float32),
            jax.ShapeDtypeStruct((2, B, H), jnp.float32),
        ),
        in_specs=[vmem() for _ in range(10)],
        out_specs=(vmem(), vmem(), vmem()),
        scratch_shapes=[
            pltpu.VMEM((S, B, 4 * H), jnp.float32),   # precomputed layer-0 gates
            pltpu.VMEM((S, B, H), jnp.float32),       # per-step h1 slab for FC
        ],
    )(embedded, h_init, c_init,
      params["wih0"], params["whh0"], params["b0"],
      wcat1, params["b1"],
      params["wfc"], params["bfc"])

    return pred, (hn, cn)


# ---------------------------------------------------------------------------
# Synthetic parameters + pure-JAX reference
# ---------------------------------------------------------------------------
def make_params(key, vocab, emb, hidden, out):
    """Deterministic synthetic parameters (same shapes as the PyTorch module)."""
    ks = jax.random.split(key, 10)
    u = lambda k, shape: jax.random.uniform(k, shape, jnp.float32, -0.1, 0.1)
    return {
        "embedding": u(ks[0], (vocab, emb)),
        # weight_ih_l0: torch shape (4H, E) -> stored transposed (E, 4H)
        "wih0": u(ks[1], (emb, 4 * hidden)),
        "whh0": u(ks[2], (hidden, 4 * hidden)),
        # bias_ih_l0 + bias_hh_l0 combined, kept 2D for TPU layout
        "b0": u(ks[3], (1, 4 * hidden)),
        "wih1": u(ks[4], (hidden, 4 * hidden)),
        "whh1": u(ks[5], (hidden, 4 * hidden)),
        "b1": u(ks[6], (1, 4 * hidden)),
        # fc: torch (O, H) -> stored transposed (H, O)
        "wfc": u(ks[7], (hidden, out)),
        "bfc": u(ks[8], (1, out)),
    }


def _lstm_cell(x, h, c, w_ih, w_hh, b):
    """PyTorch LSTM cell (gate order i, f, g, o) — reference only."""
    H = h.shape[-1]
    gates = (jnp.dot(x, w_ih, preferred_element_type=jnp.float32)
             + jnp.dot(h, w_hh, preferred_element_type=jnp.float32)
             + b)
    i = jax.nn.sigmoid(gates[:, 0 * H:1 * H])
    f = jax.nn.sigmoid(gates[:, 1 * H:2 * H])
    g = jnp.tanh(gates[:, 2 * H:3 * H])
    o = jax.nn.sigmoid(gates[:, 3 * H:4 * H])
    c_new = f * c + i * g
    h_new = o * jnp.tanh(c_new)
    return h_new, c_new


def reference_forward(inputs, params, hidden_and_cell=None):
    """Pure-JAX reference (lax.scan) for sanity checking."""
    embedded = jnp.take(params["embedding"], inputs, axis=0)
    B = inputs.shape[1]
    H = params["whh0"].shape[0]
    if hidden_and_cell is None:
        z = jnp.zeros((B, H), jnp.float32)
        init = (z, z, z, z)
    else:
        h_init, c_init = hidden_and_cell
        init = (h_init[0], c_init[0], h_init[1], c_init[1])

    def step(carry, x_t):
        h0, c0, h1, c1 = carry
        h0, c0 = _lstm_cell(x_t, h0, c0, params["wih0"], params["whh0"], params["b0"])
        h0_32 = h0.astype(jnp.float32)
        h1, c1 = _lstm_cell(h0_32, h1, c1, params["wih1"], params["whh1"], params["b1"])
        return (h0, c0, h1, c1), h1

    (h0, c0, h1, c1), out = jax.lax.scan(step, init, embedded)
    pred = jnp.dot(out, params["wfc"]) + params["bfc"]
    return pred, (jnp.stack([h0, h1]), jnp.stack([c0, c1]))


# ---------------------------------------------------------------------------
# Demo / sanity check
# ---------------------------------------------------------------------------
if __name__ == "__main__":
    # small shapes consistent with the module
    VOCAB, EMB, HIDDEN, OUT = 20, 16, 32, 20
    SEQ, BATCH = 8, 8

    key = jax.random.PRNGKey(0)
    pkey, ikey, hkey, ckey = jax.random.split(key, 4)
    params = make_params(pkey, VOCAB, EMB, HIDDEN, OUT)
    inputs = jax.random.randint(ikey, (SEQ, BATCH), 0, VOCAB, dtype=jnp.int32)

    # --- default path (zero initial state, like the PyTorch module) ---
    pred, (h_n, c_n) = char_lstm_forward(inputs, params)
    jax.block_until_ready((pred, h_n, c_n))

    ref_pred, (ref_h, ref_c) = reference_forward(inputs, params)
    assert pred.shape == (SEQ, BATCH, OUT)
    assert h_n.shape == (2, BATCH, HIDDEN) and c_n.shape == (2, BATCH, HIDDEN)
    assert jnp.allclose(pred, ref_pred, atol=5e-2, rtol=5e-2)
    assert jnp.allclose(h_n, ref_h, atol=5e-2, rtol=5e-2)
    assert jnp.allclose(c_n, ref_c, atol=5e-2, rtol=5e-2)

    # --- explicit (non-zero) initial hidden/cell state path ---
    h0 = jax.random.uniform(hkey, (2, BATCH, HIDDEN), jnp.float32, -0.5, 0.5)
    c0 = jax.random.uniform(ckey, (2, BATCH, HIDDEN), jnp.float32, -0.5, 0.5)
    pred2, (h_n2, c_n2) = char_lstm_forward(inputs, params, (h0, c0))
    jax.block_until_ready((pred2, h_n2, c_n2))

    ref_pred2, (ref_h2, ref_c2) = reference_forward(inputs, params, (h0, c0))
    assert jnp.allclose(pred2, ref_pred2, atol=5e-2, rtol=5e-2)
    assert jnp.allclose(h_n2, ref_h2, atol=5e-2, rtol=5e-2)
    assert jnp.allclose(c_n2, ref_c2, atol=5e-2, rtol=5e-2)

    print("KERNEL_OK")
</pallas_src>

<mosaic_0001>
module attributes {stable_mosaic.version = 11 : i64} {
  func.func @char_lstm_kernel(%arg0: memref<8x8x16xf32, #tpu.memory_space<vmem>>, %arg1: memref<2x8x32xf32, #tpu.memory_space<vmem>>, %arg2: memref<2x8x32xf32, #tpu.memory_space<vmem>>, %arg3: memref<16x128xf32, #tpu.memory_space<vmem>>, %arg4: memref<32x128xf32, #tpu.memory_space<vmem>>, %arg5: memref<1x128xf32, #tpu.memory_space<vmem>>, %arg6: memref<64x128xf32, #tpu.memory_space<vmem>>, %arg7: memref<1x128xf32, #tpu.memory_space<vmem>>, %arg8: memref<32x20xf32, #tpu.memory_space<vmem>>, %arg9: memref<1x20xf32, #tpu.memory_space<vmem>>, %arg10: memref<8x8x20xf32, #tpu.memory_space<vmem>>, %arg11: memref<2x8x32xf32, #tpu.memory_space<vmem>>, %arg12: memref<2x8x32xf32, #tpu.memory_space<vmem>>, %arg13: memref<8x8x128xf32, #tpu.memory_space<vmem>>, %arg14: memref<8x8x32xf32, #tpu.memory_space<vmem>>) attributes {dimension_semantics = [], scalar_prefetch = 0 : i64, scratch_operands = 2 : i64, tpu.core_type = #tpu.core_type<tc>} {
    %c0 = arith.constant 0 : index
    %c0_0 = arith.constant 0 : index
    %c0_1 = arith.constant 0 : index
    %0 = vector.load %arg0[%c0, %c0_0, %c0_1] : memref<8x8x16xf32, #tpu.memory_space<vmem>>, vector<8x8x16xf32>
    %1 = vector.shape_cast %0 : vector<8x8x16xf32> to vector<64x16xf32>
    %c0_2 = arith.constant 0 : index
    %c0_3 = arith.constant 0 : index
    %2 = vector.load %arg3[%c0_2, %c0_3] : memref<16x128xf32, #tpu.memory_space<vmem>>, vector<16x128xf32>
    %cst = arith.constant dense<0.000000e+00> : vector<64x128xf32>
    %3 = tpu.matmul %1, %2, %cst {dimension_numbers = #tpu.dot_dimension_numbers<[1], [0], [0], [1], [0, 0, 1, 1], [], []>} : vector<64x16xf32>, vector<16x128xf32>, vector<64x128xf32> -> vector<64x128xf32>
    %c0_4 = arith.constant 0 : index
    %c0_5 = arith.constant 0 : index
    %4 = vector.load %arg5[%c0_4, %c0_5] : memref<1x128xf32, #tpu.memory_space<vmem>>, vector<1x128xf32>
    %5 = vector.broadcast %4 : vector<1x128xf32> to vector<64x128xf32>
    %6 = arith.addf %3, %5 : vector<64x128xf32>
    %7 = vector.shape_cast %6 : vector<64x128xf32> to vector<8x8x128xf32>
    %c0_6 = arith.constant 0 : index
    %c0_7 = arith.constant 0 : index
    %c0_8 = arith.constant 0 : index
    %8 = vector.load %arg13[%c0_6, %c0_7, %c0_8] : memref<8x8x128xf32, #tpu.memory_space<vmem>>, vector<8x8x128xf32>
    tpu.vector_store %arg13[%c0_6, %c0_7, %c0_8], %7 {strides = array<i32>} : memref<8x8x128xf32, #tpu.memory_space<vmem>>, vector<8x8x128xf32>,
    %c0_9 = arith.constant 0 : index
    %c0_10 = arith.constant 0 : index
    %9 = vector.load %arg4[%c0_9, %c0_10] : memref<32x128xf32, #tpu.memory_space<vmem>>, vector<32x128xf32>
    %c0_11 = arith.constant 0 : index
    %c0_12 = arith.constant 0 : index
    %10 = vector.load %arg6[%c0_11, %c0_12] : memref<64x128xf32, #tpu.memory_space<vmem>>, vector<64x128xf32>
    %c0_13 = arith.constant 0 : index
    %c0_14 = arith.constant 0 : index
    %11 = vector.load %arg7[%c0_13, %c0_14] : memref<1x128xf32, #tpu.memory_space<vmem>>, vector<1x128xf32>
    %12 = vector.shape_cast %11 : vector<1x128xf32> to vector<1x128xf32>
    %13 = vector.broadcast %12 : vector<1x128xf32> to vector<8x128xf32>
    %c0_15 = arith.constant 0 : index
    %c0_16 = arith.constant 0 : index
    %c0_17 = arith.constant 0 : index
    %14 = vector.load %arg1[%c0_15, %c0_16, %c0_17] : memref<2x8x32xf32, #tpu.memory_space<vmem>>, vector<1x8x32xf32>
    %15 = vector.shape_cast %14 : vector<1x8x32xf32> to vector<8x32xf32>
    %c0_18 = arith.constant 0 : index
    %c0_19 = arith.constant 0 : index
    %c0_20 = arith.constant 0 : index
    %16 = vector.load %arg2[%c0_18, %c0_19, %c0_20] : memref<2x8x32xf32, #tpu.memory_space<vmem>>, vector<1x8x32xf32>
    %17 = vector.shape_cast %16 : vector<1x8x32xf32> to vector<8x32xf32>
    %c1 = arith.constant 1 : index
    %c0_21 = arith.constant 0 : index
    %c0_22 = arith.constant 0 : index
    %18 = vector.load %arg1[%c1, %c0_21, %c0_22] : memref<2x8x32xf32, #tpu.memory_space<vmem>>, vector<1x8x32xf32>
    %19 = vector.shape_cast %18 : vector<1x8x32xf32> to vector<8x32xf32>
    %c1_23 = arith.constant 1 : index
    %c0_24 = arith.constant 0 : index
    %c0_25 = arith.constant 0 : index
    %20 = vector.load %arg2[%c1_23, %c0_24, %c0_25] : memref<2x8x32xf32, #tpu.memory_space<vmem>>, vector<1x8x32xf32>
    %21 = vector.shape_cast %20 : vector<1x8x32xf32> to vector<8x32xf32>
    %c0_i32 = arith.constant 0 : i32
    %22 = arith.index_cast %c0_i32 : i32 to index
    %c0_26 = arith.constant 0 : index
    %c0_27 = arith.constant 0 : index
    %23 = vector.load %arg13[%22, %c0_26, %c0_27] : memref<8x8x128xf32, #tpu.memory_space<vmem>>, vector<1x8x128xf32>
    %24 = vector.shape_cast %23 : vector<1x8x128xf32> to vector<8x128xf32>
    %cst_28 = arith.constant dense<0.000000e+00> : vector<8x128xf32>
    %25 = tpu.matmul %15, %9, %cst_28 {dimension_numbers = #tpu.dot_dimension_numbers<[1], [0], [0], [1], [0, 0, 1, 1], [], []>} : vector<8x32xf32>, vector<32x128xf32>, vector<8x128xf32> -> vector<8x128xf32>
    %26 = arith.addf %24, %25 : vector<8x128xf32>
    %27 = vector.extract_strided_slice %26 {offsets = [0, 0], sizes = [8, 32], strides = [1, 1]} : vector<8x128xf32> to vector<8x32xf32>
    %28 = arith.negf %27 : vector<8x32xf32>
    %29 = math.exp %28 : vector<8x32xf32>
    %cst_29 = arith.constant 1.000000e+00 : f32
    %30 = vector.broadcast %cst_29 : f32 to vector<8x32xf32>
    %31 = arith.addf %30, %29 : vector<8x32xf32>
    %32 = arith.divf %30, %31 : vector<8x32xf32>
    %33 = vector.extract_strided_slice %26 {offsets = [0, 32], sizes = [8, 32], strides = [1, 1]} : vector<8x128xf32> to vector<8x32xf32>
    %34 = arith.negf %33 : vector<8x32xf32>
    %35 = math.exp %34 : vector<8x32xf32>
    %cst_30 = arith.constant 1.000000e+00 : f32
    %36 = vector.broadcast %cst_30 : f32 to vector<8x32xf32>
    %37 = arith.addf %36, %35 : vector<8x32xf32>
    %38 = arith.divf %36, %37 : vector<8x32xf32>
    %39 = vector.extract_strided_slice %26 {offsets = [0, 64], sizes = [8, 32], strides = [1, 1]} : vector<8x128xf32> to vector<8x32xf32>
    %40 = math.tanh %39 : vector<8x32xf32>
    %41 = vector.extract_strided_slice %26 {offsets = [0, 96], sizes = [8, 32], strides = [1, 1]} : vector<8x128xf32> to vector<8x32xf32>
    %42 = arith.negf %41 : vector<8x32xf32>
    %43 = math.exp %42 : vector<8x32xf32>
    %cst_31 = arith.constant 1.000000e+00 : f32
    %44 = vector.broadcast %cst_31 : f32 to vector<8x32xf32>
    %45 = arith.addf %44, %43 : vector<8x32xf32>
    %46 = arith.divf %44, %45 : vector<8x32xf32>
    %47 = arith.mulf %38, %17 : vector<8x32xf32>
    %48 = arith.mulf %32, %40 : vector<8x32xf32>
    %49 = arith.addf %47, %48 : vector<8x32xf32>
    %50 = math.tanh %49 : vector<8x32xf32>
    %51 = arith.mulf %46, %50 : vector<8x32xf32>
    %52 = tpu.concatenate %51, %19 in 1 : vector<8x32xf32>, vector<8x32xf32> -> vector<8x64xf32>
    %cst_32 = arith.constant dense<0.000000e+00> : vector<8x128xf32>
    %53 = tpu.matmul %52, %10, %cst_32 {dimension_numbers = #tpu.dot_dimension_numbers<[1], [0], [0], [1], [0, 0, 1, 1], [], []>} : vector<8x64xf32>, vector<64x128xf32>, vector<8x128xf32> -> vector<8x128xf32>
    %54 = arith.addf %53, %13 : vector<8x128xf32>
    %55 = vector.extract_strided_slice %54 {offsets = [0, 0], sizes = [8, 32], strides = [1, 1]} : vector<8x128xf32> to vector<8x32xf32>
    %56 = arith.negf %55 : vector<8x32xf32>
    %57 = math.exp %56 : vector<8x32xf32>
    %cst_33 = arith.constant 1.000000e+00 : f32
    %58 = vector.broadcast %cst_33 : f32 to vector<8x32xf32>
    %59 = arith.addf %58, %57 : vector<8x32xf32>
    %60 = arith.divf %58, %59 : vector<8x32xf32>
    %61 = vector.extract_strided_slice %54 {offsets = [0, 32], sizes = [8, 32], strides = [1, 1]} : vector<8x128xf32> to vector<8x32xf32>
    %62 = arith.negf %61 : vector<8x32xf32>
    %63 = math.exp %62 : vector<8x32xf32>
    %cst_34 = arith.constant 1.000000e+00 : f32
    %64 = vector.broadcast %cst_34 : f32 to vector<8x32xf32>
    %65 = arith.addf %64, %63 : vector<8x32xf32>
    %66 = arith.divf %64, %65 : vector<8x32xf32>
    %67 = vector.extract_strided_slice %54 {offsets = [0, 64], sizes = [8, 32], strides = [1, 1]} : vector<8x128xf32> to vector<8x32xf32>
    %68 = math.tanh %67 : vector<8x32xf32>
    %69 = vector.extract_strided_slice %54 {offsets = [0, 96], sizes = [8, 32], strides = [1, 1]} : vector<8x128xf32> to vector<8x32xf32>
    %70 = arith.negf %69 : vector<8x32xf32>
    %71 = math.exp %70 : vector<8x32xf32>
    %cst_35 = arith.constant 1.000000e+00 : f32
    %72 = vector.broadcast %cst_35 : f32 to vector<8x32xf32>
    %73 = arith.addf %72, %71 : vector<8x32xf32>
    %74 = arith.divf %72, %73 : vector<8x32xf32>
    %75 = arith.mulf %66, %21 : vector<8x32xf32>
    %76 = arith.mulf %60, %68 : vector<8x32xf32>
    %77 = arith.addf %75, %76 : vector<8x32xf32>
    %78 = math.tanh %77 : vector<8x32xf32>
    %79 = arith.mulf %74, %78 : vector<8x32xf32>
    %80 = arith.index_cast %c0_i32 : i32 to index
    %c0_36 = arith.constant 0 : index
    %c0_37 = arith.constant 0 : index
    %81 = vector.load %arg14[%80, %c0_36, %c0_37] : memref<8x8x32xf32, #tpu.memory_space<vmem>>, vector<1x8x32xf32>
    %82 = vector.shape_cast %81 : vector<1x8x32xf32> to vector<8x32xf32>
    %83 = vector.shape_cast %79 : vector<8x32xf32> to vector<1x8x32xf32>
    tpu.vector_store %arg14[%80, %c0_36, %c0_37], %83 {strides = array<i32>} : memref<8x8x32xf32, #tpu.memory_space<vmem>>, vector<1x8x32xf32>,
    %c1_i32 = arith.constant 1 : i32
    %84 = arith.index_cast %c1_i32 : i32 to index
    %c0_38 = arith.constant 0 : index
    %c0_39 = arith.constant 0 : index
    %85 = vector.load %arg13[%84, %c0_38, %c0_39] : memref<8x8x128xf32, #tpu.memory_space<vmem>>, vector<1x8x128xf32>
    %86 = vector.shape_cast %85 : vector<1x8x128xf32> to vector<8x128xf32>
    %cst_40 = arith.constant dense<0.000000e+00> : vector<8x128xf32>
    %87 = tpu.matmul %51, %9, %cst_40 {dimension_numbers = #tpu.dot_dimension_numbers<[1], [0], [0], [1], [0, 0, 1, 1], [], []>} : vector<8x32xf32>, vector<32x128xf32>, vector<8x128xf32> -> vector<8x128xf32>
    %88 = arith.addf %86, %87 : vector<8x128xf32>
    %89 = vector.extract_strided_slice %88 {offsets = [0, 0], sizes = [8, 32], strides = [1, 1]} : vector<8x128xf32> to vector<8x32xf32>
    %90 = arith.negf %89 : vector<8x32xf32>
    %91 = math.exp %90 : vector<8x32xf32>
    %cst_41 = arith.constant 1.000000e+00 : f32
    %92 = vector.broadcast %cst_41 : f32 to vector<8x32xf32>
    %93 = arith.addf %92, %91 : vector<8x32xf32>
    %94 = arith.divf %92, %93 : vector<8x32xf32>
    %95 = vector.extract_strided_slice %88 {offsets = [0, 32], sizes = [8, 32], strides = [1, 1]} : vector<8x128xf32> to vector<8x32xf32>
    %96 = arith.negf %95 : vector<8x32xf32>
    %97 = math.exp %96 : vector<8x32xf32>
    %cst_42 = arith.constant 1.000000e+00 : f32
    %98 = vector.broadcast %cst_42 : f32 to vector<8x32xf32>
    %99 = arith.addf %98, %97 : vector<8x32xf32>
    %100 = arith.divf %98, %99 : vector<8x32xf32>
    %101 = vector.extract_strided_slice %88 {offsets = [0, 64], sizes = [8, 32], strides = [1, 1]} : vector<8x128xf32> to vector<8x32xf32>
    %102 = math.tanh %101 : vector<8x32xf32>
    %103 = vector.extract_strided_slice %88 {offsets = [0, 96], sizes = [8, 32], strides = [1, 1]} : vector<8x128xf32> to vector<8x32xf32>
    %104 = arith.negf %103 : vector<8x32xf32>
    %105 = math.exp %104 : vector<8x32xf32>
    %cst_43 = arith.constant 1.000000e+00 : f32
    %106 = vector.broadcast %cst_43 : f32 to vector<8x32xf32>
    %107 = arith.addf %106, %105 : vector<8x32xf32>
    %108 = arith.divf %106, %107 : vector<8x32xf32>
    %109 = arith.mulf %100, %49 : vector<8x32xf32>
    %110 = arith.mulf %94, %102 : vector<8x32xf32>
    %111 = arith.addf %109, %110 : vector<8x32xf32>
    %112 = math.tanh %111 : vector<8x32xf32>
    %113 = arith.mulf %108, %112 : vector<8x32xf32>
    %114 = tpu.concatenate %113, %79 in 1 : vector<8x32xf32>, vector<8x32xf32> -> vector<8x64xf32>
    %cst_44 = arith.constant dense<0.000000e+00> : vector<8x128xf32>
    %115 = tpu.matmul %114, %10, %cst_44 {dimension_numbers = #tpu.dot_dimension_numbers<[1], [0], [0], [1], [0, 0, 1, 1], [], []>} : vector<8x64xf32>, vector<64x128xf32>, vector<8x128xf32> -> vector<8x128xf32>
    %116 = arith.addf %115, %13 : vector<8x128xf32>
    %117 = vector.extract_strided_slice %116 {offsets = [0, 0], sizes = [8, 32], strides = [1, 1]} : vector<8x128xf32> to vector<8x32xf32>
    %118 = arith.negf %117 : vector<8x32xf32>
    %119 = math.exp %118 : vector<8x32xf32>
    %cst_45 = arith.constant 1.000000e+00 : f32
    %120 = vector.broadcast %cst_45 : f32 to vector<8x32xf32>
    %121 = arith.addf %120, %119 : vector<8x32xf32>
    %122 = arith.divf %120, %121 : vector<8x32xf32>
    %123 = vector.extract_strided_slice %116 {offsets = [0, 32], sizes = [8, 32], strides = [1, 1]} : vector<8x128xf32> to vector<8x32xf32>
    %124 = arith.negf %123 : vector<8x32xf32>
    %125 = math.exp %124 : vector<8x32xf32>
    %cst_46 = arith.constant 1.000000e+00 : f32
    %126 = vector.broadcast %cst_46 : f32 to vector<8x32xf32>
    %127 = arith.addf %126, %125 : vector<8x32xf32>
    %128 = arith.divf %126, %127 : vector<8x32xf32>
    %129 = vector.extract_strided_slice %116 {offsets = [0, 64], sizes = [8, 32], strides = [1, 1]} : vector<8x128xf32> to vector<8x32xf32>
    %130 = math.tanh %129 : vector<8x32xf32>
    %131 = vector.extract_strided_slice %116 {offsets = [0, 96], sizes = [8, 32], strides = [1, 1]} : vector<8x128xf32> to vector<8x32xf32>
    %132 = arith.negf %131 : vector<8x32xf32>
    %133 = math.exp %132 : vector<8x32xf32>
    %cst_47 = arith.constant 1.000000e+00 : f32
    %134 = vector.broadcast %cst_47 : f32 to vector<8x32xf32>
    %135 = arith.addf %134, %133 : vector<8x32xf32>
    %136 = arith.divf %134, %135 : vector<8x32xf32>
    %137 = arith.mulf %128, %77 : vector<8x32xf32>
    %138 = arith.mulf %122, %130 : vector<8x32xf32>
    %139 = arith.addf %137, %138 : vector<8x32xf32>
    %140 = math.tanh %139 : vector<8x32xf32>
    %141 = arith.mulf %136, %140 : vector<8x32xf32>
    %142 = arith.index_cast %c1_i32 : i32 to index
    %c0_48 = arith.constant 0 : index
    %c0_49 = arith.constant 0 : index
    %143 = vector.load %arg14[%142, %c0_48, %c0_49] : memref<8x8x32xf32, #tpu.memory_space<vmem>>, vector<1x8x32xf32>
    %144 = vector.shape_cast %143 : vector<1x8x32xf32> to vector<8x32xf32>
    %145 = vector.shape_cast %141 : vector<8x32xf32> to vector<1x8x32xf32>
    tpu.vector_store %arg14[%142, %c0_48, %c0_49], %145 {strides = array<i32>} : memref<8x8x32xf32, #tpu.memory_space<vmem>>, vector<1x8x32xf32>,
    %c2_i32 = arith.constant 2 : i32
    %146 = arith.index_cast %c2_i32 : i32 to index
    %c0_50 = arith.constant 0 : index
    %c0_51 = arith.constant 0 : index
    %147 = vector.load %arg13[%146, %c0_50, %c0_51] : memref<8x8x128xf32, #tpu.memory_space<vmem>>, vector<1x8x128xf32>
    %148 = vector.shape_cast %147 : vector<1x8x128xf32> to vector<8x128xf32>
    %cst_52 = arith.constant dense<0.000000e+00> : vector<8x128xf32>
    %149 = tpu.matmul %113, %9, %cst_52 {dimension_numbers = #tpu.dot_dimension_numbers<[1], [0], [0], [1], [0, 0, 1, 1], [], []>} : vector<8x32xf32>, vector<32x128xf32>, vector<8x128xf32> -> vector<8x128xf32>
    %150 = arith.addf %148, %149 : vector<8x128xf32>
    %151 = vector.extract_strided_slice %150 {offsets = [0, 0], sizes = [8, 32], strides = [1, 1]} : vector<8x128xf32> to vector<8x32xf32>
    %152 = arith.negf %151 : vector<8x32xf32>
    %153 = math.exp %152 : vector<8x32xf32>
    %cst_53 = arith.constant 1.000000e+00 : f32
    %154 = vector.broadcast %cst_53 : f32 to vector<8x32xf32>
    %155 = arith.addf %154, %153 : vector<8x32xf32>
    %156 = arith.divf %154, %155 : vector<8x32xf32>
    %157 = vector.extract_strided_slice %150 {offsets = [0, 32], sizes = [8, 32], strides = [1, 1]} : vector<8x128xf32> to vector<8x32xf32>
    %158 = arith.negf %157 : vector<8x32xf32>
    %159 = math.exp %158 : vector<8x32xf32>
    %cst_54 = arith.constant 1.000000e+00 : f32
    %160 = vector.broadcast %cst_54 : f32 to vector<8x32xf32>
    %161 = arith.addf %160, %159 : vector<8x32xf32>
    %162 = arith.divf %160, %161 : vector<8x32xf32>
    %163 = vector.extract_strided_slice %150 {offsets = [0, 64], sizes = [8, 32], strides = [1, 1]} : vector<8x128xf32> to vector<8x32xf32>
    %164 = math.tanh %163 : vector<8x32xf32>
    %165 = vector.extract_strided_slice %150 {offsets = [0, 96], sizes = [8, 32], strides = [1, 1]} : vector<8x128xf32> to vector<8x32xf32>
    %166 = arith.negf %165 : vector<8x32xf32>
    %167 = math.exp %166 : vector<8x32xf32>
    %cst_55 = arith.constant 1.000000e+00 : f32
    %168 = vector.broadcast %cst_55 : f32 to vector<8x32xf32>
    %169 = arith.addf %168, %167 : vector<8x32xf32>
    %170 = arith.divf %168, %169 : vector<8x32xf32>
    %171 = arith.mulf %162, %111 : vector<8x32xf32>
    %172 = arith.mulf %156, %164 : vector<8x32xf32>
    %173 = arith.addf %171, %172 : vector<8x32xf32>
    %174 = math.tanh %173 : vector<8x32xf32>
    %175 = arith.mulf %170, %174 : vector<8x32xf32>
    %176 = tpu.concatenate %175, %141 in 1 : vector<8x32xf32>, vector<8x32xf32> -> vector<8x64xf32>
    %cst_56 = arith.constant dense<0.000000e+00> : vector<8x128xf32>
    %177 = tpu.matmul %176, %10, %cst_56 {dimension_numbers = #tpu.dot_dimension_numbers<[1], [0], [0], [1], [0, 0, 1, 1], [], []>} : vector<8x64xf32>, vector<64x128xf32>, vector<8x128xf32> -> vector<8x128xf32>
    %178 = arith.addf %177, %13 : vector<8x128xf32>
    %179 = vector.extract_strided_slice %178 {offsets = [0, 0], sizes = [8, 32], strides = [1, 1]} : vector<8x128xf32> to vector<8x32xf32>
    %180 = arith.negf %179 : vector<8x32xf32>
    %181 = math.exp %180 : vector<8x32xf32>
    %cst_57 = arith.constant 1.000000e+00 : f32
    %182 = vector.broadcast %cst_57 : f32 to vector<8x32xf32>
    %183 = arith.addf %182, %181 : vector<8x32xf32>
    %184 = arith.divf %182, %183 : vector<8x32xf32>
    %185 = vector.extract_strided_slice %178 {offsets = [0, 32], sizes = [8, 32], strides = [1, 1]} : vector<8x128xf32> to vector<8x32xf32>
    %186 = arith.negf %185 : vector<8x32xf32>
    %187 = math.exp %186 : vector<8x32xf32>
    %cst_58 = arith.constant 1.000000e+00 : f32
    %188 = vector.broadcast %cst_58 : f32 to vector<8x32xf32>
    %189 = arith.addf %188, %187 : vector<8x32xf32>
    %190 = arith.divf %188, %189 : vector<8x32xf32>
    %191 = vector.extract_strided_slice %178 {offsets = [0, 64], sizes = [8, 32], strides = [1, 1]} : vector<8x128xf32> to vector<8x32xf32>
    %192 = math.tanh %191 : vector<8x32xf32>
    %193 = vector.extract_strided_slice %178 {offsets = [0, 96], sizes = [8, 32], strides = [1, 1]} : vector<8x128xf32> to vector<8x32xf32>
    %194 = arith.negf %193 : vector<8x32xf32>
    %195 = math.exp %194 : vector<8x32xf32>
    %cst_59 = arith.constant 1.000000e+00 : f32
    %196 = vector.broadcast %cst_59 : f32 to vector<8x32xf32>
    %197 = arith.addf %196, %195 : vector<8x32xf32>
    %198 = arith.divf %196, %197 : vector<8x32xf32>
    %199 = arith.mulf %190, %139 : vector<8x32xf32>
    %200 = arith.mulf %184, %192 : vector<8x32xf32>
    %201 = arith.addf %199, %200 : vector<8x32xf32>
    %202 = math.tanh %201 : vector<8x32xf32>
    %203 = arith.mulf %198, %202 : vector<8x32xf32>
    %204 = arith.index_cast %c2_i32 : i32 to index
    %c0_60 = arith.constant 0 : index
    %c0_61 = arith.constant 0 : index
    %205 = vector.load %arg14[%204, %c0_60, %c0_61] : memref<8x8x32xf32, #tpu.memory_space<vmem>>, vector<1x8x32xf32>
    %206 = vector.shape_cast %205 : vector<1x8x32xf32> to vector<8x32xf32>
    %207 = vector.shape_cast %203 : vector<8x32xf32> to vector<1x8x32xf32>
    tpu.vector_store %arg14[%204, %c0_60, %c0_61], %207 {strides = array<i32>} : memref<8x8x32xf32, #tpu.memory_space<vmem>>, vector<1x8x32xf32>,
    %c3_i32 = arith.constant 3 : i32
    %208 = arith.index_cast %c3_i32 : i32 to index
    %c0_62 = arith.constant 0 : index
    %c0_63 = arith.constant 0 : index
    %209 = vector.load %arg13[%208, %c0_62, %c0_63] : memref<8x8x128xf32, #tpu.memory_space<vmem>>, vector<1x8x128xf32>
    %210 = vector.shape_cast %209 : vector<1x8x128xf32> to vector<8x128xf32>
    %cst_64 = arith.constant dense<0.000000e+00> : vector<8x128xf32>
    %211 = tpu.matmul %175, %9, %cst_64 {dimension_numbers = #tpu.dot_dimension_numbers<[1], [0], [0], [1], [0, 0, 1, 1], [], []>} : vector<8x32xf32>, vector<32x128xf32>, vector<8x128xf32> -> vector<8x128xf32>
    %212 = arith.addf %210, %211 : vector<8x128xf32>
    %213 = vector.extract_strided_slice %212 {offsets = [0, 0], sizes = [8, 32], strides = [1, 1]} : vector<8x128xf32> to vector<8x32xf32>
    %214 = arith.negf %213 : vector<8x32xf32>
    %215 = math.exp %214 : vector<8x32xf32>
    %cst_65 = arith.constant 1.000000e+00 : f32
    %216 = vector.broadcast %cst_65 : f32 to vector<8x32xf32>
    %217 = arith.addf %216, %215 : vector<8x32xf32>
    %218 = arith.divf %216, %217 : vector<8x32xf32>
    %219 = vector.extract_strided_slice %212 {offsets = [0, 32], sizes = [8, 32], strides = [1, 1]} : vector<8x128xf32> to vector<8x32xf32>
    %220 = arith.negf %219 : vector<8x32xf32>
    %221 = math.exp %220 : vector<8x32xf32>
    %cst_66 = arith.constant 1.000000e+00 : f32
    %222 = vector.broadcast %cst_66 : f32 to vector<8x32xf32>
    %223 = arith.addf %222, %221 : vector<8x32xf32>
    %224 = arith.divf %222, %223 : vector<8x32xf32>
    %225 = vector.extract_strided_slice %212 {offsets = [0, 64], sizes = [8, 32], strides = [1, 1]} : vector<8x128xf32> to vector<8x32xf32>
    %226 = math.tanh %225 : vector<8x32xf32>
    %227 = vector.extract_strided_slice %212 {offsets = [0, 96], sizes = [8, 32], strides = [1, 1]} : vector<8x128xf32> to vector<8x32xf32>
    %228 = arith.negf %227 : vector<8x32xf32>
    %229 = math.exp %228 : vector<8x32xf32>
    %cst_67 = arith.constant 1.000000e+00 : f32
    %230 = vector.broadcast %cst_67 : f32 to vector<8x32xf32>
    %231 = arith.addf %230, %229 : vector<8x32xf32>
    %232 = arith.divf %230, %231 : vector<8x32xf32>
    %233 = arith.mulf %224, %173 : vector<8x32xf32>
    %234 = arith.mulf %218, %226 : vector<8x32xf32>
    %235 = arith.addf %233, %234 : vector<8x32xf32>
    %236 = math.tanh %235 : vector<8x32xf32>
    %237 = arith.mulf %232, %236 : vector<8x32xf32>
    %238 = tpu.concatenate %237, %203 in 1 : vector<8x32xf32>, vector<8x32xf32> -> vector<8x64xf32>
    %cst_68 = arith.constant dense<0.000000e+00> : vector<8x128xf32>
    %239 = tpu.matmul %238, %10, %cst_68 {dimension_numbers = #tpu.dot_dimension_numbers<[1], [0], [0], [1], [0, 0, 1, 1], [], []>} : vector<8x64xf32>, vector<64x128xf32>, vector<8x128xf32> -> vector<8x128xf32>
    %240 = arith.addf %239, %13 : vector<8x128xf32>
    %241 = vector.extract_strided_slice %240 {offsets = [0, 0], sizes = [8, 32], strides = [1, 1]} : vector<8x128xf32> to vector<8x32xf32>
    %242 = arith.negf %241 : vector<8x32xf32>
    %243 = math.exp %242 : vector<8x32xf32>
    %cst_69 = arith.constant 1.000000e+00 : f32
    %244 = vector.broadcast %cst_69 : f32 to vector<8x32xf32>
    %245 = arith.addf %244, %243 : vector<8x32xf32>
    %246 = arith.divf %244, %245 : vector<8x32xf32>
    %247 = vector.extract_strided_slice %240 {offsets = [0, 32], sizes = [8, 32], strides = [1, 1]} : vector<8x128xf32> to vector<8x32xf32>
    %248 = arith.negf %247 : vector<8x32xf32>
    %249 = math.exp %248 : vector<8x32xf32>
    %cst_70 = arith.constant 1.000000e+00 : f32
    %250 = vector.broadcast %cst_70 : f32 to vector<8x32xf32>
    %251 = arith.addf %250, %249 : vector<8x32xf32>
    %252 = arith.divf %250, %251 : vector<8x32xf32>
    %253 = vector.extract_strided_slice %240 {offsets = [0, 64], sizes = [8, 32], strides = [1, 1]} : vector<8x128xf32> to vector<8x32xf32>
    %254 = math.tanh %253 : vector<8x32xf32>
    %255 = vector.extract_strided_slice %240 {offsets = [0, 96], sizes = [8, 32], strides = [1, 1]} : vector<8x128xf32> to vector<8x32xf32>
    %256 = arith.negf %255 : vector<8x32xf32>
    %257 = math.exp %256 : vector<8x32xf32>
    %cst_71 = arith.constant 1.000000e+00 : f32
    %258 = vector.broadcast %cst_71 : f32 to vector<8x32xf32>
    %259 = arith.addf %258, %257 : vector<8x32xf32>
    %260 = arith.divf %258, %259 : vector<8x32xf32>
    %261 = arith.mulf %252, %201 : vector<8x32xf32>
    %262 = arith.mulf %246, %254 : vector<8x32xf32>
    %263 = arith.addf %261, %262 : vector<8x32xf32>
    %264 = math.tanh %263 : vector<8x32xf32>
    %265 = arith.mulf %260, %264 : vector<8x32xf32>
    %266 = arith.index_cast %c3_i32 : i32 to index
    %c0_72 = arith.constant 0 : index
    %c0_73 = arith.constant 0 : index
    %267 = vector.load %arg14[%266, %c0_72, %c0_73] : memref<8x8x32xf32, #tpu.memory_space<vmem>>, vector<1x8x32xf32>
    %268 = vector.shape_cast %267 : vector<1x8x32xf32> to vector<8x32xf32>
    %269 = vector.shape_cast %265 : vector<8x32xf32> to vector<1x8x32xf32>
    tpu.vector_store %arg14[%266, %c0_72, %c0_73], %269 {strides = array<i32>} : memref<8x8x32xf32, #tpu.memory_space<vmem>>, vector<1x8x32xf32>,
    %c4_i32 = arith.constant 4 : i32
    %270 = arith.index_cast %c4_i32 : i32 to index
    %c0_74 = arith.constant 0 : index
    %c0_75 = arith.constant 0 : index
    %271 = vector.load %arg13[%270, %c0_74, %c0_75] : memref<8x8x128xf32, #tpu.memory_space<vmem>>, vector<1x8x128xf32>
    %272 = vector.shape_cast %271 : vector<1x8x128xf32> to vector<8x128xf32>
    %cst_76 = arith.constant dense<0.000000e+00> : vector<8x128xf32>
    %273 = tpu.matmul %237, %9, %cst_76 {dimension_numbers = #tpu.dot_dimension_numbers<[1], [0], [0], [1], [0, 0, 1, 1], [], []>} : vector<8x32xf32>, vector<32x128xf32>, vector<8x128xf32> -> vector<8x128xf32>
    %274 = arith.addf %272, %273 : vector<8x128xf32>
    %275 = vector.extract_strided_slice %274 {offsets = [0, 0], sizes = [8, 32], strides = [1, 1]} : vector<8x128xf32> to vector<8x32xf32>
    %276 = arith.negf %275 : vector<8x32xf32>
    %277 = math.exp %276 : vector<8x32xf32>
    %cst_77 = arith.constant 1.000000e+00 : f32
    %278 = vector.broadcast %cst_77 : f32 to vector<8x32xf32>
    %279 = arith.addf %278, %277 : vector<8x32xf32>
    %280 = arith.divf %278, %279 : vector<8x32xf32>
    %281 = vector.extract_strided_slice %274 {offsets = [0, 32], sizes = [8, 32], strides = [1, 1]} : vector<8x128xf32> to vector<8x32xf32>
    %282 = arith.negf %281 : vector<8x32xf32>
    %283 = math.exp %282 : vector<8x32xf32>
    %cst_78 = arith.constant 1.000000e+00 : f32
    %284 = vector.broadcast %cst_78 : f32 to vector<8x32xf32>
    %285 = arith.addf %284, %283 : vector<8x32xf32>
    %286 = arith.divf %284, %285 : vector<8x32xf32>
    %287 = vector.extract_strided_slice %274 {offsets = [0, 64], sizes = [8, 32], strides = [1, 1]} : vector<8x128xf32> to vector<8x32xf32>
    %288 = math.tanh %287 : vector<8x32xf32>
    %289 = vector.extract_strided_slice %274 {offsets = [0, 96], sizes = [8, 32], strides = [1, 1]} : vector<8x128xf32> to vector<8x32xf32>
    %290 = arith.negf %289 : vector<8x32xf32>
    %291 = math.exp %290 : vector<8x32xf32>
    %cst_79 = arith.constant 1.000000e+00 : f32
    %292 = vector.broadcast %cst_79 : f32 to vector<8x32xf32>
    %293 = arith.addf %292, %291 : vector<8x32xf32>
    %294 = arith.divf %292, %293 : vector<8x32xf32>
    %295 = arith.mulf %286, %235 : vector<8x32xf32>
    %296 = arith.mulf %280, %288 : vector<8x32xf32>
    %297 = arith.addf %295, %296 : vector<8x32xf32>
    %298 = math.tanh %297 : vector<8x32xf32>
    %299 = arith.mulf %294, %298 : vector<8x32xf32>
    %300 = tpu.concatenate %299, %265 in 1 : vector<8x32xf32>, vector<8x32xf32> -> vector<8x64xf32>
    %cst_80 = arith.constant dense<0.000000e+00> : vector<8x128xf32>
    %301 = tpu.matmul %300, %10, %cst_80 {dimension_numbers = #tpu.dot_dimension_numbers<[1], [0], [0], [1], [0, 0, 1, 1], [], []>} : vector<8x64xf32>, vector<64x128xf32>, vector<8x128xf32> -> vector<8x128xf32>
    %302 = arith.addf %301, %13 : vector<8x128xf32>
    %303 = vector.extract_strided_slice %302 {offsets = [0, 0], sizes = [8, 32], strides = [1, 1]} : vector<8x128xf32> to vector<8x32xf32>
    %304 = arith.negf %303 : vector<8x32xf32>
    %305 = math.exp %304 : vector<8x32xf32>
    %cst_81 = arith.constant 1.000000e+00 : f32
    %306 = vector.broadcast %cst_81 : f32 to vector<8x32xf32>
    %307 = arith.addf %306, %305 : vector<8x32xf32>
    %308 = arith.divf %306, %307 : vector<8x32xf32>
    %309 = vector.extract_strided_slice %302 {offsets = [0, 32], sizes = [8, 32], strides = [1, 1]} : vector<8x128xf32> to vector<8x32xf32>
    %310 = arith.negf %309 : vector<8x32xf32>
    %311 = math.exp %310 : vector<8x32xf32>
    %cst_82 = arith.constant 1.000000e+00 : f32
    %312 = vector.broadcast %cst_82 : f32 to vector<8x32xf32>
    %313 = arith.addf %312, %311 : vector<8x32xf32>
    %314 = arith.divf %312, %313 : vector<8x32xf32>
    %315 = vector.extract_strided_slice %302 {offsets = [0, 64], sizes = [8, 32], strides = [1, 1]} : vector<8x128xf32> to vector<8x32xf32>
    %316 = math.tanh %315 : vector<8x32xf32>
    %317 = vector.extract_strided_slice %302 {offsets = [0, 96], sizes = [8, 32], strides = [1, 1]} : vector<8x128xf32> to vector<8x32xf32>
    %318 = arith.negf %317 : vector<8x32xf32>
    %319 = math.exp %318 : vector<8x32xf32>
    %cst_83 = arith.constant 1.000000e+00 : f32
    %320 = vector.broadcast %cst_83 : f32 to vector<8x32xf32>
    %321 = arith.addf %320, %319 : vector<8x32xf32>
    %322 = arith.divf %320, %321 : vector<8x32xf32>
    %323 = arith.mulf %314, %263 : vector<8x32xf32>
    %324 = arith.mulf %308, %316 : vector<8x32xf32>
    %325 = arith.addf %323, %324 : vector<8x32xf32>
    %326 = math.tanh %325 : vector<8x32xf32>
    %327 = arith.mulf %322, %326 : vector<8x32xf32>
    %328 = arith.index_cast %c4_i32 : i32 to index
    %c0_84 = arith.constant 0 : index
    %c0_85 = arith.constant 0 : index
    %329 = vector.load %arg14[%328, %c0_84, %c0_85] : memref<8x8x32xf32, #tpu.memory_space<vmem>>, vector<1x8x32xf32>
    %330 = vector.shape_cast %329 : vector<1x8x32xf32> to vector<8x32xf32>
    %331 = vector.shape_cast %327 : vector<8x32xf32> to vector<1x8x32xf32>
    tpu.vector_store %arg14[%328, %c0_84, %c0_85], %331 {strides = array<i32>} : memref<8x8x32xf32, #tpu.memory_space<vmem>>, vector<1x8x32xf32>,
    %c5_i32 = arith.constant 5 : i32
    %332 = arith.index_cast %c5_i32 : i32 to index
    %c0_86 = arith.constant 0 : index
    %c0_87 = arith.constant 0 : index
    %333 = vector.load %arg13[%332, %c0_86, %c0_87] : memref<8x8x128xf32, #tpu.memory_space<vmem>>, vector<1x8x128xf32>
    %334 = vector.shape_cast %333 : vector<1x8x128xf32> to vector<8x128xf32>
    %cst_88 = arith.constant dense<0.000000e+00> : vector<8x128xf32>
    %335 = tpu.matmul %299, %9, %cst_88 {dimension_numbers = #tpu.dot_dimension_numbers<[1], [0], [0], [1], [0, 0, 1, 1], [], []>} : vector<8x32xf32>, vector<32x128xf32>, vector<8x128xf32> -> vector<8x128xf32>
    %336 = arith.addf %334, %335 : vector<8x128xf32>
    %337 = vector.extract_strided_slice %336 {offsets = [0, 0], sizes = [8, 32], strides = [1, 1]} : vector<8x128xf32> to vector<8x32xf32>
    %338 = arith.negf %337 : vector<8x32xf32>
    %339 = math.exp %338 : vector<8x32xf32>
    %cst_89 = arith.constant 1.000000e+00 : f32
    %340 = vector.broadcast %cst_89 : f32 to vector<8x32xf32>
    %341 = arith.addf %340, %339 : vector<8x32xf32>
    %342 = arith.divf %340, %341 : vector<8x32xf32>
    %343 = vector.extract_strided_slice %336 {offsets = [0, 32], sizes = [8, 32], strides = [1, 1]} : vector<8x128xf32> to vector<8x32xf32>
    %344 = arith.negf %343 : vector<8x32xf32>
    %345 = math.exp %344 : vector<8x32xf32>
    %cst_90 = arith.constant 1.000000e+00 : f32
    %346 = vector.broadcast %cst_90 : f32 to vector<8x32xf32>
    %347 = arith.addf %346, %345 : vector<8x32xf32>
    %348 = arith.divf %346, %347 : vector<8x32xf32>
    %349 = vector.extract_strided_slice %336 {offsets = [0, 64], sizes = [8, 32], strides = [1, 1]} : vector<8x128xf32> to vector<8x32xf32>
    %350 = math.tanh %349 : vector<8x32xf32>
    %351 = vector.extract_strided_slice %336 {offsets = [0, 96], sizes = [8, 32], strides = [1, 1]} : vector<8x128xf32> to vector<8x32xf32>
    %352 = arith.negf %351 : vector<8x32xf32>
    %353 = math.exp %352 : vector<8x32xf32>
    %cst_91 = arith.constant 1.000000e+00 : f32
    %354 = vector.broadcast %cst_91 : f32 to vector<8x32xf32>
    %355 = arith.addf %354, %353 : vector<8x32xf32>
    %356 = arith.divf %354, %355 : vector<8x32xf32>
    %357 = arith.mulf %348, %297 : vector<8x32xf32>
    %358 = arith.mulf %342, %350 : vector<8x32xf32>
    %359 = arith.addf %357, %358 : vector<8x32xf32>
    %360 = math.tanh %359 : vector<8x32xf32>
    %361 = arith.mulf %356, %360 : vector<8x32xf32>
    %362 = tpu.concatenate %361, %327 in 1 : vector<8x32xf32>, vector<8x32xf32> -> vector<8x64xf32>
    %cst_92 = arith.constant dense<0.000000e+00> : vector<8x128xf32>
    %363 = tpu.matmul %362, %10, %cst_92 {dimension_numbers = #tpu.dot_dimension_numbers<[1], [0], [0], [1], [0, 0, 1, 1], [], []>} : vector<8x64xf32>, vector<64x128xf32>, vector<8x128xf32> -> vector<8x128xf32>
    %364 = arith.addf %363, %13 : vector<8x128xf32>
    %365 = vector.extract_strided_slice %364 {offsets = [0, 0], sizes = [8, 32], strides = [1, 1]} : vector<8x128xf32> to vector<8x32xf32>
    %366 = arith.negf %365 : vector<8x32xf32>
    %367 = math.exp %366 : vector<8x32xf32>
    %cst_93 = arith.constant 1.000000e+00 : f32
    %368 = vector.broadcast %cst_93 : f32 to vector<8x32xf32>
    %369 = arith.addf %368, %367 : vector<8x32xf32>
    %370 = arith.divf %368, %369 : vector<8x32xf32>
    %371 = vector.extract_strided_slice %364 {offsets = [0, 32], sizes = [8, 32], strides = [1, 1]} : vector<8x128xf32> to vector<8x32xf32>
    %372 = arith.negf %371 : vector<8x32xf32>
    %373 = math.exp %372 : vector<8x32xf32>
    %cst_94 = arith.constant 1.000000e+00 : f32
    %374 = vector.broadcast %cst_94 : f32 to vector<8x32xf32>
    %375 = arith.addf %374, %373 : vector<8x32xf32>
    %376 = arith.divf %374, %375 : vector<8x32xf32>
    %377 = vector.extract_strided_slice %364 {offsets = [0, 64], sizes = [8, 32], strides = [1, 1]} : vector<8x128xf32> to vector<8x32xf32>
    %378 = math.tanh %377 : vector<8x32xf32>
    %379 = vector.extract_strided_slice %364 {offsets = [0, 96], sizes = [8, 32], strides = [1, 1]} : vector<8x128xf32> to vector<8x32xf32>
    %380 = arith.negf %379 : vector<8x32xf32>
    %381 = math.exp %380 : vector<8x32xf32>
    %cst_95 = arith.constant 1.000000e+00 : f32
    %382 = vector.broadcast %cst_95 : f32 to vector<8x32xf32>
    %383 = arith.addf %382, %381 : vector<8x32xf32>
    %384 = arith.divf %382, %383 : vector<8x32xf32>
    %385 = arith.mulf %376, %325 : vector<8x32xf32>
    %386 = arith.mulf %370, %378 : vector<8x32xf32>
    %387 = arith.addf %385, %386 : vector<8x32xf32>
    %388 = math.tanh %387 : vector<8x32xf32>
    %389 = arith.mulf %384, %388 : vector<8x32xf32>
    %390 = arith.index_cast %c5_i32 : i32 to index
    %c0_96 = arith.constant 0 : index
    %c0_97 = arith.constant 0 : index
    %391 = vector.load %arg14[%390, %c0_96, %c0_97] : memref<8x8x32xf32, #tpu.memory_space<vmem>>, vector<1x8x32xf32>
    %392 = vector.shape_cast %391 : vector<1x8x32xf32> to vector<8x32xf32>
    %393 = vector.shape_cast %389 : vector<8x32xf32> to vector<1x8x32xf32>
    tpu.vector_store %arg14[%390, %c0_96, %c0_97], %393 {strides = array<i32>} : memref<8x8x32xf32, #tpu.memory_space<vmem>>, vector<1x8x32xf32>,
    %c6_i32 = arith.constant 6 : i32
    %394 = arith.index_cast %c6_i32 : i32 to index
    %c0_98 = arith.constant 0 : index
    %c0_99 = arith.constant 0 : index
    %395 = vector.load %arg13[%394, %c0_98, %c0_99] : memref<8x8x128xf32, #tpu.memory_space<vmem>>, vector<1x8x128xf32>
    %396 = vector.shape_cast %395 : vector<1x8x128xf32> to vector<8x128xf32>
    %cst_100 = arith.constant dense<0.000000e+00> : vector<8x128xf32>
    %397 = tpu.matmul %361, %9, %cst_100 {dimension_numbers = #tpu.dot_dimension_numbers<[1], [0], [0], [1], [0, 0, 1, 1], [], []>} : vector<8x32xf32>, vector<32x128xf32>, vector<8x128xf32> -> vector<8x128xf32>
    %398 = arith.addf %396, %397 : vector<8x128xf32>
    %399 = vector.extract_strided_slice %398 {offsets = [0, 0], sizes = [8, 32], strides = [1, 1]} : vector<8x128xf32> to vector<8x32xf32>
    %400 = arith.negf %399 : vector<8x32xf32>
    %401 = math.exp %400 : vector<8x32xf32>
    %cst_101 = arith.constant 1.000000e+00 : f32
    %402 = vector.broadcast %cst_101 : f32 to vector<8x32xf32>
    %403 = arith.addf %402, %401 : vector<8x32xf32>
    %404 = arith.divf %402, %403 : vector<8x32xf32>
    %405 = vector.extract_strided_slice %398 {offsets = [0, 32], sizes = [8, 32], strides = [1, 1]} : vector<8x128xf32> to vector<8x32xf32>
    %406 = arith.negf %405 : vector<8x32xf32>
    %407 = math.exp %406 : vector<8x32xf32>
    %cst_102 = arith.constant 1.000000e+00 : f32
    %408 = vector.broadcast %cst_102 : f32 to vector<8x32xf32>
    %409 = arith.addf %408, %407 : vector<8x32xf32>
    %410 = arith.divf %408, %409 : vector<8x32xf32>
    %411 = vector.extract_strided_slice %398 {offsets = [0, 64], sizes = [8, 32], strides = [1, 1]} : vector<8x128xf32> to vector<8x32xf32>
    %412 = math.tanh %411 : vector<8x32xf32>
    %413 = vector.extract_strided_slice %398 {offsets = [0, 96], sizes = [8, 32], strides = [1, 1]} : vector<8x128xf32> to vector<8x32xf32>
    %414 = arith.negf %413 : vector<8x32xf32>
    %415 = math.exp %414 : vector<8x32xf32>
    %cst_103 = arith.constant 1.000000e+00 : f32
    %416 = vector.broadcast %cst_103 : f32 to vector<8x32xf32>
    %417 = arith.addf %416, %415 : vector<8x32xf32>
    %418 = arith.divf %416, %417 : vector<8x32xf32>
    %419 = arith.mulf %410, %359 : vector<8x32xf32>
    %420 = arith.mulf %404, %412 : vector<8x32xf32>
    %421 = arith.addf %419, %420 : vector<8x32xf32>
    %422 = math.tanh %421 : vector<8x32xf32>
    %423 = arith.mulf %418, %422 : vector<8x32xf32>
    %424 = tpu.concatenate %423, %389 in 1 : vector<8x32xf32>, vector<8x32xf32> -> vector<8x64xf32>
    %cst_104 = arith.constant dense<0.000000e+00> : vector<8x128xf32>
    %425 = tpu.matmul %424, %10, %cst_104 {dimension_numbers = #tpu.dot_dimension_numbers<[1], [0], [0], [1], [0, 0, 1, 1], [], []>} : vector<8x64xf32>, vector<64x128xf32>, vector<8x128xf32> -> vector<8x128xf32>
    %426 = arith.addf %425, %13 : vector<8x128xf32>
    %427 = vector.extract_strided_slice %426 {offsets = [0, 0], sizes = [8, 32], strides = [1, 1]} : vector<8x128xf32> to vector<8x32xf32>
    %428 = arith.negf %427 : vector<8x32xf32>
    %429 = math.exp %428 : vector<8x32xf32>
    %cst_105 = arith.constant 1.000000e+00 : f32
    %430 = vector.broadcast %cst_105 : f32 to vector<8x32xf32>
    %431 = arith.addf %430, %429 : vector<8x32xf32>
    %432 = arith.divf %430, %431 : vector<8x32xf32>
    %433 = vector.extract_strided_slice %426 {offsets = [0, 32], sizes = [8, 32], strides = [1, 1]} : vector<8x128xf32> to vector<8x32xf32>
    %434 = arith.negf %433 : vector<8x32xf32>
    %435 = math.exp %434 : vector<8x32xf32>
    %cst_106 = arith.constant 1.000000e+00 : f32
    %436 = vector.broadcast %cst_106 : f32 to vector<8x32xf32>
    %437 = arith.addf %436, %435 : vector<8x32xf32>
    %438 = arith.divf %436, %437 : vector<8x32xf32>
    %439 = vector.extract_strided_slice %426 {offsets = [0, 64], sizes = [8, 32], strides = [1, 1]} : vector<8x128xf32> to vector<8x32xf32>
    %440 = math.tanh %439 : vector<8x32xf32>
    %441 = vector.extract_strided_slice %426 {offsets = [0, 96], sizes = [8, 32], strides = [1, 1]} : vector<8x128xf32> to vector<8x32xf32>
    %442 = arith.negf %441 : vector<8x32xf32>
    %443 = math.exp %442 : vector<8x32xf32>
    %cst_107 = arith.constant 1.000000e+00 : f32
    %444 = vector.broadcast %cst_107 : f32 to vector<8x32xf32>
    %445 = arith.addf %444, %443 : vector<8x32xf32>
    %446 = arith.divf %444, %445 : vector<8x32xf32>
    %447 = arith.mulf %438, %387 : vector<8x32xf32>
    %448 = arith.mulf %432, %440 : vector<8x32xf32>
    %449 = arith.addf %447, %448 : vector<8x32xf32>
    %450 = math.tanh %449 : vector<8x32xf32>
    %451 = arith.mulf %446, %450 : vector<8x32xf32>
    %452 = arith.index_cast %c6_i32 : i32 to index
    %c0_108 = arith.constant 0 : index
    %c0_109 = arith.constant 0 : index
    %453 = vector.load %arg14[%452, %c0_108, %c0_109] : memref<8x8x32xf32, #tpu.memory_space<vmem>>, vector<1x8x32xf32>
    %454 = vector.shape_cast %453 : vector<1x8x32xf32> to vector<8x32xf32>
    %455 = vector.shape_cast %451 : vector<8x32xf32> to vector<1x8x32xf32>
    tpu.vector_store %arg14[%452, %c0_108, %c0_109], %455 {strides = array<i32>} : memref<8x8x32xf32, #tpu.memory_space<vmem>>, vector<1x8x32xf32>,
    %c7_i32 = arith.constant 7 : i32
    %456 = arith.index_cast %c7_i32 : i32 to index
    %c0_110 = arith.constant 0 : index
    %c0_111 = arith.constant 0 : index
    %457 = vector.load %arg13[%456, %c0_110, %c0_111] : memref<8x8x128xf32, #tpu.memory_space<vmem>>, vector<1x8x128xf32>
    %458 = vector.shape_cast %457 : vector<1x8x128xf32> to vector<8x128xf32>
    %cst_112 = arith.constant dense<0.000000e+00> : vector<8x128xf32>
    %459 = tpu.matmul %423, %9, %cst_112 {dimension_numbers = #tpu.dot_dimension_numbers<[1], [0], [0], [1], [0, 0, 1, 1], [], []>} : vector<8x32xf32>, vector<32x128xf32>, vector<8x128xf32> -> vector<8x128xf32>
    %460 = arith.addf %458, %459 : vector<8x128xf32>
    %461 = vector.extract_strided_slice %460 {offsets = [0, 0], sizes = [8, 32], strides = [1, 1]} : vector<8x128xf32> to vector<8x32xf32>
    %462 = arith.negf %461 : vector<8x32xf32>
    %463 = math.exp %462 : vector<8x32xf32>
    %cst_113 = arith.constant 1.000000e+00 : f32
    %464 = vector.broadcast %cst_113 : f32 to vector<8x32xf32>
    %465 = arith.addf %464, %463 : vector<8x32xf32>
    %466 = arith.divf %464, %465 : vector<8x32xf32>
    %467 = vector.extract_strided_slice %460 {offsets = [0, 32], sizes = [8, 32], strides = [1, 1]} : vector<8x128xf32> to vector<8x32xf32>
    %468 = arith.negf %467 : vector<8x32xf32>
    %469 = math.exp %468 : vector<8x32xf32>
    %cst_114 = arith.constant 1.000000e+00 : f32
    %470 = vector.broadcast %cst_114 : f32 to vector<8x32xf32>
    %471 = arith.addf %470, %469 : vector<8x32xf32>
    %472 = arith.divf %470, %471 : vector<8x32xf32>
    %473 = vector.extract_strided_slice %460 {offsets = [0, 64], sizes = [8, 32], strides = [1, 1]} : vector<8x128xf32> to vector<8x32xf32>
    %474 = math.tanh %473 : vector<8x32xf32>
    %475 = vector.extract_strided_slice %460 {offsets = [0, 96], sizes = [8, 32], strides = [1, 1]} : vector<8x128xf32> to vector<8x32xf32>
    %476 = arith.negf %475 : vector<8x32xf32>
    %477 = math.exp %476 : vector<8x32xf32>
    %cst_115 = arith.constant 1.000000e+00 : f32
    %478 = vector.broadcast %cst_115 : f32 to vector<8x32xf32>
    %479 = arith.addf %478, %477 : vector<8x32xf32>
    %480 = arith.divf %478, %479 : vector<8x32xf32>
    %481 = arith.mulf %472, %421 : vector<8x32xf32>
    %482 = arith.mulf %466, %474 : vector<8x32xf32>
    %483 = arith.addf %481, %482 : vector<8x32xf32>
    %484 = math.tanh %483 : vector<8x32xf32>
    %485 = arith.mulf %480, %484 : vector<8x32xf32>
    %486 = tpu.concatenate %485, %451 in 1 : vector<8x32xf32>, vector<8x32xf32> -> vector<8x64xf32>
    %cst_116 = arith.constant dense<0.000000e+00> : vector<8x128xf32>
    %487 = tpu.matmul %486, %10, %cst_116 {dimension_numbers = #tpu.dot_dimension_numbers<[1], [0], [0], [1], [0, 0, 1, 1], [], []>} : vector<8x64xf32>, vector<64x128xf32>, vector<8x128xf32> -> vector<8x128xf32>
    %488 = arith.addf %487, %13 : vector<8x128xf32>
    %489 = vector.extract_strided_slice %488 {offsets = [0, 0], sizes = [8, 32], strides = [1, 1]} : vector<8x128xf32> to vector<8x32xf32>
    %490 = arith.negf %489 : vector<8x32xf32>
    %491 = math.exp %490 : vector<8x32xf32>
    %cst_117 = arith.constant 1.000000e+00 : f32
    %492 = vector.broadcast %cst_117 : f32 to vector<8x32xf32>
    %493 = arith.addf %492, %491 : vector<8x32xf32>
    %494 = arith.divf %492, %493 : vector<8x32xf32>
    %495 = vector.extract_strided_slice %488 {offsets = [0, 32], sizes = [8, 32], strides = [1, 1]} : vector<8x128xf32> to vector<8x32xf32>
    %496 = arith.negf %495 : vector<8x32xf32>
    %497 = math.exp %496 : vector<8x32xf32>
    %cst_118 = arith.constant 1.000000e+00 : f32
    %498 = vector.broadcast %cst_118 : f32 to vector<8x32xf32>
    %499 = arith.addf %498, %497 : vector<8x32xf32>
    %500 = arith.divf %498, %499 : vector<8x32xf32>
    %501 = vector.extract_strided_slice %488 {offsets = [0, 64], sizes = [8, 32], strides = [1, 1]} : vector<8x128xf32> to vector<8x32xf32>
    %502 = math.tanh %501 : vector<8x32xf32>
    %503 = vector.extract_strided_slice %488 {offsets = [0, 96], sizes = [8, 32], strides = [1, 1]} : vector<8x128xf32> to vector<8x32xf32>
    %504 = arith.negf %503 : vector<8x32xf32>
    %505 = math.exp %504 : vector<8x32xf32>
    %cst_119 = arith.constant 1.000000e+00 : f32
    %506 = vector.broadcast %cst_119 : f32 to vector<8x32xf32>
    %507 = arith.addf %506, %505 : vector<8x32xf32>
    %508 = arith.divf %506, %507 : vector<8x32xf32>
    %509 = arith.mulf %500, %449 : vector<8x32xf32>
    %510 = arith.mulf %494, %502 : vector<8x32xf32>
    %511 = arith.addf %509, %510 : vector<8x32xf32>
    %512 = math.tanh %511 : vector<8x32xf32>
    %513 = arith.mulf %508, %512 : vector<8x32xf32>
    %514 = arith.index_cast %c7_i32 : i32 to index
    %c0_120 = arith.constant 0 : index
    %c0_121 = arith.constant 0 : index
    %515 = vector.load %arg14[%514, %c0_120, %c0_121] : memref<8x8x32xf32, #tpu.memory_space<vmem>>, vector<1x8x32xf32>
    %516 = vector.shape_cast %515 : vector<1x8x32xf32> to vector<8x32xf32>
    %517 = vector.shape_cast %513 : vector<8x32xf32> to vector<1x8x32xf32>
    tpu.vector_store %arg14[%514, %c0_120, %c0_121], %517 {strides = array<i32>} : memref<8x8x32xf32, #tpu.memory_space<vmem>>, vector<1x8x32xf32>,
    %c8_i32 = arith.constant 8 : i32
    %c0_122 = arith.constant 0 : index
    %c0_123 = arith.constant 0 : index
    %c0_124 = arith.constant 0 : index
    %518 = vector.load %arg14[%c0_122, %c0_123, %c0_124] : memref<8x8x32xf32, #tpu.memory_space<vmem>>, vector<8x8x32xf32>
    %519 = vector.shape_cast %518 : vector<8x8x32xf32> to vector<64x32xf32>
    %c0_125 = arith.constant 0 : index
    %c0_126 = arith.constant 0 : index
    %520 = vector.load %arg8[%c0_125, %c0_126] : memref<32x20xf32, #tpu.memory_space<vmem>>, vector<32x20xf32>
    %cst_127 = arith.constant dense<0.000000e+00> : vector<64x20xf32>
    %521 = tpu.matmul %519, %520, %cst_127 {dimension_numbers = #tpu.dot_dimension_numbers<[1], [0], [0], [1], [0, 0, 1, 1], [], []>} : vector<64x32xf32>, vector<32x20xf32>, vector<64x20xf32> -> vector<64x20xf32>
    %c0_128 = arith.constant 0 : index
    %c0_129 = arith.constant 0 : index
    %522 = vector.load %arg9[%c0_128, %c0_129] : memref<1x20xf32, #tpu.memory_space<vmem>>, vector<1x20xf32>
    %523 = vector.broadcast %522 : vector<1x20xf32> to vector<64x20xf32>
    %524 = arith.addf %521, %523 : vector<64x20xf32>
    %525 = vector.shape_cast %524 : vector<64x20xf32> to vector<8x8x20xf32>
    %c0_130 = arith.constant 0 : index
    %c0_131 = arith.constant 0 : index
    %c0_132 = arith.constant 0 : index
    %526 = vector.load %arg10[%c0_130, %c0_131, %c0_132] : memref<8x8x20xf32, #tpu.memory_space<vmem>>, vector<8x8x20xf32>
    tpu.vector_store %arg10[%c0_130, %c0_131, %c0_132], %525 {strides = array<i32>} : memref<8x8x20xf32, #tpu.memory_space<vmem>>, vector<8x8x20xf32>,
    %c0_133 = arith.constant 0 : index
    %c0_134 = arith.constant 0 : index
    %c0_135 = arith.constant 0 : index
    %527 = vector.load %arg11[%c0_133, %c0_134, %c0_135] : memref<2x8x32xf32, #tpu.memory_space<vmem>>, vector<1x8x32xf32>
    %528 = vector.shape_cast %527 : vector<1x8x32xf32> to vector<8x32xf32>
    %529 = vector.shape_cast %485 : vector<8x32xf32> to vector<1x8x32xf32>
    tpu.vector_store %arg11[%c0_133, %c0_134, %c0_135], %529 {strides = array<i32>} : memref<2x8x32xf32, #tpu.memory_space<vmem>>, vector<1x8x32xf32>,
    %c1_136 = arith.constant 1 : index
    %c0_137 = arith.constant 0 : index
    %c0_138 = arith.constant 0 : index
    %530 = vector.load %arg11[%c1_136, %c0_137, %c0_138] : memref<2x8x32xf32, #tpu.memory_space<vmem>>, vector<1x8x32xf32>
    %531 = vector.shape_cast %530 : vector<1x8x32xf32> to vector<8x32xf32>
    %532 = vector.shape_cast %513 : vector<8x32xf32> to vector<1x8x32xf32>
    tpu.vector_store %arg11[%c1_136, %c0_137, %c0_138], %532 {strides = array<i32>} : memref<2x8x32xf32, #tpu.memory_space<vmem>>, vector<1x8x32xf32>,
    %c0_139 = arith.constant 0 : index
    %c0_140 = arith.constant 0 : index
    %c0_141 = arith.constant 0 : index
    %533 = vector.load %arg12[%c0_139, %c0_140, %c0_141] : memref<2x8x32xf32, #tpu.memory_space<vmem>>, vector<1x8x32xf32>
    %534 = vector.shape_cast %533 : vector<1x8x32xf32> to vector<8x32xf32>
    %535 = vector.shape_cast %483 : vector<8x32xf32> to vector<1x8x32xf32>
    tpu.vector_store %arg12[%c0_139, %c0_140, %c0_141], %535 {strides = array<i32>} : memref<2x8x32xf32, #tpu.memory_space<vmem>>, vector<1x8x32xf32>,
    %c1_142 = arith.constant 1 : index
    %c0_143 = arith.constant 0 : index
    %c0_144 = arith.constant 0 : index
    %536 = vector.load %arg12[%c1_142, %c0_143, %c0_144] : memref<2x8x32xf32, #tpu.memory_space<vmem>>, vector<1x8x32xf32>
    %537 = vector.shape_cast %536 : vector<1x8x32xf32> to vector<8x32xf32>
    %538 = vector.shape_cast %511 : vector<8x32xf32> to vector<1x8x32xf32>
    tpu.vector_store %arg12[%c1_142, %c0_143, %c0_144], %538 {strides = array<i32>} : memref<2x8x32xf32, #tpu.memory_space<vmem>>, vector<1x8x32xf32>,
    return
  }
}

</mosaic_0001>

<bundles_post_ra>
// kernel: char_lstm_forward.1
= control target key start
LH: loop header
LB: loop body
LE: loop exit
PB: predicated region body
PF: predicated region fallthrough
CT: control target
= control target key end

     0   :  { %18 = vsyncpa [#allocation5], 0  ;;  %vm54_vm0 = vcmask 130048   ;;  %s2239_s0 = inlined_call_operand.vmem [shape: f32[8,8,16], index: 0, kind: input, shape index: {}]   ;;  %s2240_s1 = inlined_call_operand.vmem [shape: f32[2,8,32], index: 1, kind: input, shape index: {}, may-alias: {1,2}]   ;;  %s2241_s2 = inlined_call_operand.vmem [shape: f32[2,8,32], index: 2, kind: input, shape index: {}, may-alias: {1,2}]   ;;  %s2242_s3 = inlined_call_operand.vmem [shape: f32[16,128], index: 3, kind: input, shape index: {}]   ;;  %s2243_s4 = inlined_call_operand.vmem [shape: f32[32,128], index: 4, kind: input, shape index: {}]   ;;  %s2244_s5 = inlined_call_operand.vmem [shape: f32[1,128], index: 5, kind: input, shape index: {}]   ;;  %s2245_s6 = inlined_call_operand.vmem [shape: f32[64,128], index: 6, kind: input, shape index: {}]   ;;  %s2246_s7 = inlined_call_operand.vmem [shape: f32[1,128], index: 7, kind: input, shape index: {}]   ;;  %s2247_s8 = inlined_call_operand.vmem [shape: f32[32,20], index: 8, kind: input, shape index: {}]   ;;  %s2248_s9 = inlined_call_operand.vmem [shape: f32[1,20], index: 9, kind: input, shape index: {}]   ;;  %s2249_s10 = inlined_call_operand.hbm [shape: f32[8,8,20], index: 10, kind: output, shape index: {0}]   ;;  %s2250_s11 = inlined_call_operand.hbm [shape: f32[2,8,32], index: 11, kind: output, shape index: {1}]   ;;  %s2251_s12 = inlined_call_operand.hbm [shape: f32[2,8,32], index: 12, kind: output, shape index: {2}]  }
   0x1   :  { %v1756_v0 = vld [vmem:[%s2243_s4 + $0x18] sm:$0xff]  ;;  %v49_v1 = vld [vmem:[%s2242_s3 + $0x8] sm:$0xff]  ;;  %v1764_v2 = vld [vmem:[%s2243_s4 + $0x10] sm:$0xff] }
   0x2   :  { %167 = vmatpush.msra.mxu1 %v1756_v0  ;;  %93 = vmatpush.msra.mxu0 %v49_v1  ;;  %v48_v3 = vld [vmem:[%s2242_s3] sm:$0xff]  ;;  %v1776_v5 = vld [vmem:[%s2243_s4 + $0x8] sm:$0xff] }
   0x3   :  { %v40_v4 = vld [vmem:[%s2239_s0] sm:$0xff]  ;;  %312 = vmatpush.msra.mxu3 %v1756_v0 }
   0x4   :  { %168 = vmatpush.msra.mxu1 %v1764_v2  ;;  %94 = vmatpush.msra.mxu0 %v48_v3  ;;  %v1784_v6 = vld [vmem:[%s2243_s4] sm:$0xff] }
   0x5   :  { %1405 = vmatmul.msk.f32.vlgmr.msra.gmra.mxu0 %vm54_vm0, %v40_v4  ;;  %313 = vmatpush.msra.mxu3 %v1764_v2 }
   0x6   :  { %19 = vsyncpa [#allocation7], 0  ;;  %169 = vmatpush.msra.mxu1 %v1776_v5  ;;  %v144_v7 = vld [vmem:[%s2240_s1] sm:$0xff]  ;;  %vm151_vm1 = vcmask 261120   ;;  %s1680_s19 = smov 64   ;;  %s1681_s22 = smov 32  }
   0x7   :  { %314 = vmatpush.msra.mxu3 %v1776_v5  ;;  %v1802_v8 = vld [vmem:[%s2244_s5] ss:$0 sm:$0xff]  ;;  %v1818_v35 = vld [vmem:[%s2245_s6 + $0x38] sm:$0xff]  ;;  %v1823_v36 = vld [vmem:[%s2245_s6 + $0x30] sm:$0xff]  ;;  %vm226_vm6 = vcmask 523264   ;;  %s1371_s29 = sshll.u32 %s2250_s11, 4  ;;  %s1372_s29 = int_to_ptr.hbm [resolvable:$true] %s1371_s29 }
   0x8   :  { %170 = vmatpush.msra.mxu1 %v1784_v6  ;;  %v145_v14 = vld [vmem:[%s2241_s2] sm:$0xff]  ;;  %238 = vmatpush.msra.mxu2 %v1818_v35  ;;  %v1830_v37 = vld [vmem:[%s2245_s6 + $0x28] sm:$0xff]  ;;  %v1853_v42 = vld [vmem:[%s2245_s6 + $0x18] sm:$0xff]  ;;  %s1684_s30 = smov 128   ;;  %s1685_s13 = smov 8  }
   0x9   :  { %1415 = vmatmul.msk.f32.vlgmr.msra.gmra.mxu1 %vm151_vm1, %v144_v7  ;;  %315 = vmatpush.msra.mxu3 %v1784_v6  ;;  %v1413_v40 = vld [vmem:[%s2240_s1 + $0x8] sm:$0xff]  ;;  %v1847_v41 = vld [vmem:[%s2245_s6 + $0x20] sm:$0xff]  ;;  %v1863_v44 = vld [vmem:[%s2245_s6 + $0x10] sm:$0xff]  ;;  %s1686_s14 = smov [#allocation8]   ;;  %s1384_s17 = sshll.u32 %s2251_s12, 4  ;;  %s1385_s17 = int_to_ptr.hbm [resolvable:$true] %s1384_s17 }
   0xa   :  { %377 = vmatpush.msrb.mxu1 %v1818_v35  ;;  %1193 = vmatpush.msrb.mxu0 %v1818_v35  ;;  %v41_v43 = vld [vmem:[%s2239_s0 + $0x8] sm:$0xff]  ;;  %v1881_v46 = vld [vmem:[%s2245_s6] sm:$0xff]  ;;  %s1382_s15 = sshll.u32 %s1686_s14, 4  ;;  %s1687_s11 = smov [#allocation4]   ;;  %s1383_s15 = int_to_ptr.vmem [resolvable:$true] %s1382_s15 }
   0xb   :  { %448 = vmatpush.msrb.mxu3 %v1756_v0  ;;  %239 = vmatpush.msra.mxu2 %v1823_v36  ;;  %v1870_v45 = vld [vmem:[%s2245_s6 + $0x8] sm:$0xff]  ;;  %v1923_v54 = vld [vmem:[%s2246_s7] ss:$0 sm:$0xff]  ;;  %s1356_s1 = sshll.u32 %s1687_s11, 4  ;;  %s1357_s1 = int_to_ptr.vmem [resolvable:$true] %s1356_s1 }
   0xc   :  { %378 = vmatpush.msrb.mxu1 %v1823_v36  ;;  %1194 = vmatpush.msrb.mxu0 %v1823_v36  ;;  %v1414_v58 = vld [vmem:[%s2241_s2 + $0x8] sm:$0xff]  ;;  %s1682_s2 = smov 96  }
   0xd   :  { %449 = vmatpush.msrb.mxu3 %v1764_v2  ;;  %240 = vmatpush.msra.mxu2 %v1830_v37 }
   0xe   :  { %379 = vmatpush.msrb.mxu1 %v1830_v37  ;;  %1195 = vmatpush.msrb.mxu0 %v1830_v37 }
   0xf   :  { %450 = vmatpush.msrb.mxu3 %v1776_v5  ;;  %241 = vmatpush.msra.mxu2 %v1847_v41 }
  0x10   :  { %380 = vmatpush.msrb.mxu1 %v1847_v41  ;;  %1406 = vmatmul.msk.f32.gmra.mxu0 %vm54_vm0, %v41_v43 }
  0x11   :  { %451 = vmatpush.msrb.mxu3 %v1784_v6  ;;  %242 = vmatpush.msra.mxu2 %v1853_v42 }
  0x12   :  { %381 = vmatpush.msrb.mxu1 %v1853_v42  ;;  %1196 = vmatpush.msrb.mxu0 %v1847_v41 }
  0x13   :  { %243 = vmatpush.msra.mxu2 %v1863_v44 }
  0x14   :  { %382 = vmatpush.msrb.mxu1 %v1863_v44  ;;  %1197 = vmatpush.msrb.mxu0 %v1853_v42 }
  0x15   :  { %244 = vmatpush.msra.mxu2 %v1870_v45 }
  0x16   :  { %383 = vmatpush.msrb.mxu1 %v1870_v45  ;;  %1198 = vmatpush.msrb.mxu0 %v1863_v44 }
  0x17   :  { %245 = vmatpush.msra.mxu2 %v1881_v46 }
  0x18   :  { %384 = vmatpush.msrb.mxu1 %v1881_v46  ;;  %1199 = vmatpush.msrb.mxu0 %v1870_v45 }
  0x19   :  { %513 = vmatpush.msrb.mxu2 %v1818_v35 }
  0x1a   :  { %649 = vmatpush.msra.mxu1 %v1818_v35  ;;  %1200 = vmatpush.msrb.mxu0 %v1881_v46 }
  0x1b   :  { %514 = vmatpush.msrb.mxu2 %v1823_v36 }
  0x1c   :  { %650 = vmatpush.msra.mxu1 %v1823_v36 }
  0x1d   :  { %515 = vmatpush.msrb.mxu2 %v1830_v37 }
  0x1e   :  { %651 = vmatpush.msra.mxu1 %v1830_v37 }
  0x1f   :  { %516 = vmatpush.msrb.mxu2 %v1847_v41 }
  0x20   :  { %652 = vmatpush.msra.mxu1 %v1847_v41 }
  0x21   :  { %517 = vmatpush.msrb.mxu2 %v1853_v42 }
  0x22   :  { %653 = vmatpush.msra.mxu1 %v1853_v42 }
  0x23   :  { %518 = vmatpush.msrb.mxu2 %v1863_v44 }
  0x24   :  { %654 = vmatpush.msra.mxu1 %v1863_v44 }
  0x25   :  { %519 = vmatpush.msrb.mxu2 %v1870_v45 }
  0x26   :  { %655 = vmatpush.msra.mxu1 %v1870_v45 }
  0x27   :  { %520 = vmatpush.msrb.mxu2 %v1881_v46 }
  0x28   :  { %656 = vmatpush.msra.mxu1 %v1881_v46 }
  0x82   :  { %v96_v9 = vpop.f32.mrf.mxu0 }
  0x83   :  { %v97_v10 = vadd.f32 %v1802_v8, %v96_v9 }
  0x86   :  { %v172_v11 = vpop.f32.mrf.mxu1 }
  0x87   :  { %v175_v12 = vadd.f32 %v172_v11, %v97_v10 }
  0x89   :  { %1474 = vtanh.f32 %v175_v12  ;;  %v1416_v15 = vmul.f32 -1.442695, %v175_v12 }
  0x8b   :  { %1476 = vpow2.f32 %v1416_v15 }
  0x8d   :  { %v99_v50 = vpop.f32.mrf.mxu0 }
  0x8e   :  { %v100_v51 = vadd.f32 %v1802_v8, %v99_v50 }
  0x8f   :  { %v1475_v13 = vpop.eup %1474 }
  0x90   :  { %202 = vrot.lane.b32.xlu0 %v1475_v13, %s1680_s19 }
  0x91   :  { %v1477_v16 = vpop.eup %1476 }
  0x92   :  { %v179_v17 = vadd.f32 1.0, %v1477_v16 }
  0x94   :  { %1478 = vrcp.f32 %v179_v17  ;;  %v191_v23 = vand.u32 2147483648, %v179_v17  ;;  %vm185_vm3 = vweird.f32 %v179_v17  ;;  %v189_v24 = vand.u32 2147483647, %v179_v17 }
  0x96   :  { %v192_v26 = vor.u32 1.1754944e-38, %v191_v23  ;;  %vm190_vm5 = vcmp.eq.f32.partialorder %v189_v24, 8.507059e+37 }
  0x98   :  { %197 = vrot.lane.b32.xlu0 %v145_v14, %s1681_s22 }
  0x9a   :  { %v1479_v18 = vpop.eup %1478 }
  0x9b   :  { %v181_v19 = vmul.f32 %v1479_v18, %v179_v17  ;;  %vm186_vm2 = vweird.f32 %v1479_v18 }
  0x9c   :  { %vm187_vm4 = vmor %vm185_vm3, %vm186_vm2 }
  0x9d   :  { %v182_v20 = vsub.f32 1.0, %v181_v19 }
  0x9f   :  { %v183_v21 = vmul.f32 %v1479_v18, %v182_v20 }
  0xa1   :  { %v184_v22 = vadd.f32 %v1479_v18, %v183_v21 }
  0xa3   :  { %v188_v25 = vsel %vm187_vm4, %v1479_v18, %v184_v22 }
  0xa4   :  { %v193_v28 = vsel %vm190_vm5, %v192_v26, %v188_v25 }
 0x102   :  { %v203_v27 = vpop.permute.xlu0 %202 }
 0x103   :  { %v205_v29 = vmul.f32 %v203_v27, %v193_v28 }
 0x105   :  { %207 = vrot.lane.b32.xlu1 %v205_v29, %s1681_s22 }
 0x10a   :  { %v198_v30 = vpop.permute.xlu0 %197 }
 0x10b   :  { %v200_v31 = vmul.f32 %v198_v30, %v193_v28 }
 0x177   :  { %v208_v32 = vpop.permute.xlu1 %207 }
 0x178   :  { %v1811_v33 = vadd.f32 %v208_v32, %v200_v31 }
 0x17a   :  { %1480 = vtanh.f32 %v1811_v33 }
 0x180   :  { %v1481_v34 = vpop.eup %1480 }
 0x181   :  { %213 = vrot.lane.b32.xlu1 %v1481_v34, %s1680_s19 }
 0x1f3   :  { %v214_v38 = vpop.permute.xlu1 %213 }
 0x1f4   :  { %v216_v39 = vmul.f32 %v214_v38, %v193_v28 }
 0x1f6   :  { %218 = vrot.lane.b32.xlu2 %v216_v39, %s1681_s22 }
 0x1fe   :  { %222 = vrot.lane.b32.xlu2 %v1413_v40, %s1681_s22 }
 0x250   :  { %v219_v47 = vpop.permute.xlu2 %218 }
 0x251   :  { %1419 = vmatmul.msk.f32.vlgmr.msra.gmra.mxu3 %vm151_vm1, %v219_v47 }
 0x252   :  { %584 = vmatpush.msra.mxu3 %v1756_v0 }
 0x254   :  { %585 = vmatpush.msra.mxu3 %v1764_v2 }
 0x256   :  { %586 = vmatpush.msra.mxu3 %v1776_v5 }
 0x258   :  { %v223_v48 = vpop.permute.xlu2 %222  ;;  %587 = vmatpush.msra.mxu3 %v1784_v6 }
 0x259   :  { %v225_v49 = vsel %vm151_vm1, %v219_v47, %v223_v48 }
 0x25a   :  { %1417 = vmatmul.msk.f32.vlgmr.msra.gmra.mxu2 %vm226_vm6, %v225_v49 }
 0x25b   :  { %785 = vmatpush.msra.mxu2 %v1818_v35 }
 0x25d   :  { %786 = vmatpush.msra.mxu2 %v1823_v36 }
 0x25f   :  { %787 = vmatpush.msra.mxu2 %v1830_v37 }
 0x261   :  { %788 = vmatpush.msra.mxu2 %v1847_v41 }
 0x263   :  { %789 = vmatpush.msra.mxu2 %v1853_v42 }
 0x265   :  { %790 = vmatpush.msra.mxu2 %v1863_v44 }
 0x267   :  { %791 = vmatpush.msra.mxu2 %v1870_v45 }
 0x269   :  { %792 = vmatpush.msra.mxu2 %v1881_v46 }
 0x2d4   :  { %v317_v52 = vpop.f32.mrf.mxu3 }
 0x2d5   :  { %v320_v53 = vadd.f32 %v317_v52, %v100_v51  ;;  %v42_v52 = vld [vmem:[%s2239_s0 + $0x10] sm:$0xff] }
 0x2d6   :  { %1407 = vmatmul.msk.f32.gmra.mxu0 %vm54_vm0, %v42_v52 }
 0x2d7   :  { %1482 = vtanh.f32 %v320_v53  ;;  %v1420_v60 = vmul.f32 -1.442695, %v320_v53 }
 0x2dd   :  { %v1483_v55 = vpop.eup %1482  ;;  %v247_v56 = vpop.f32.mrf.mxu2 }
 0x2de   :  { %v248_v57 = vadd.f32 %v1923_v54, %v247_v56  ;;  %343 = vrot.lane.b32.xlu0 %v1483_v55, %s1680_s19 }
 0x2e0   :  { %1484 = vtanh.f32 %v248_v57  ;;  %v1418_v61 = vmul.f32 -1.442695, %v248_v57 }
 0x2e1   :  { %1486 = vpow2.f32 %v1420_v60 }
 0x2e2   :  { %1488 = vpow2.f32 %v1418_v61 }
 0x2e6   :  { %v1485_v59 = vpop.eup %1484  ;;  %271 = vrot.lane.b32.xlu0 %v1414_v58, %s1681_s22 }
 0x2e7   :  { %276 = vrot.lane.b32.xlu1 %v1485_v59, %s1680_s19  ;;  %v1487_v62 = vpop.eup %1486 }
 0x2e8   :  { %v324_v63 = vadd.f32 1.0, %v1487_v62  ;;  %v1489_v1 = vpop.eup %1488 }
 0x2e9   :  { %v253_v3 = vadd.f32 1.0, %v1489_v1 }
 0x2ea   :  { %1490 = vrcp.f32 %v324_v63  ;;  %v336_v14 = vand.u32 2147483648, %v324_v63  ;;  %vm330_vm8 = vweird.f32 %v324_v63  ;;  %v334_v16 = vand.u32 2147483647, %v324_v63 }
 0x2eb   :  { %1492 = vrcp.f32 %v253_v3  ;;  %v265_v24 = vand.u32 2147483648, %v253_v3  ;;  %vm259_vm12 = vweird.f32 %v253_v3  ;;  %v263_v25 = vand.u32 2147483647, %v253_v3 }
 0x2ec   :  { %v337_v18 = vor.u32 1.1754944e-38, %v336_v14  ;;  %vm335_vm10 = vcmp.eq.f32.partialorder %v334_v16, 8.507059e+37 }
 0x2ed   :  { %v266_v27 = vor.u32 1.1754944e-38, %v265_v24  ;;  %vm264_vm14 = vcmp.eq.f32.partialorder %v263_v25, 8.507059e+37 }
 0x2f0   :  { %v1491_v4 = vpop.eup %1490 }
 0x2f1   :  { %v326_v7 = vmul.f32 %v1491_v4, %v324_v63  ;;  %v1493_v10 = vpop.eup %1492  ;;  %vm331_vm7 = vweird.f32 %v1491_v4 }
 0x2f2   :  { %v255_v12 = vmul.f32 %v1493_v10, %v253_v3  ;;  %vm332_vm9 = vmor %vm330_vm8, %vm331_vm7  ;;  %vm260_vm11 = vweird.f32 %v1493_v10 }
 0x2f3   :  { %v327_v9 = vsub.f32 1.0, %v326_v7  ;;  %vm261_vm13 = vmor %vm259_vm12, %vm260_vm11 }
 0x2f4   :  { %v256_v15 = vsub.f32 1.0, %v255_v12 }
 0x2f5   :  { %v328_v11 = vmul.f32 %v1491_v4, %v327_v9 }
 0x2f6   :  { %v257_v19 = vmul.f32 %v1493_v10, %v256_v15 }
 0x2f7   :  { %v329_v13 = vadd.f32 %v1491_v4, %v328_v11 }
 0x2f8   :  { %v258_v23 = vadd.f32 %v1493_v10, %v257_v19 }
 0x2f9   :  { %v333_v17 = vsel %vm332_vm9, %v1491_v4, %v329_v13 }
 0x2fa   :  { %v338_v21 = vsel %vm335_vm10, %v337_v18, %v333_v17  ;;  %v262_v26 = vsel %vm261_vm13, %v1493_v10, %v258_v23 }
 0x2fb   :  { %v267_v28 = vsel %vm264_vm14, %v266_v27, %v262_v26  ;;  %v341_v31 = vmul.f32 %v338_v21, %v1811_v33 }
 0x350   :  { %v344_v20 = vpop.permute.xlu0 %343 }
 0x351   :  { %v346_v22 = vmul.f32 %v344_v20, %v338_v21 }
 0x353   :  { %348 = vrot.lane.b32.xlu2 %v346_v22, %s1681_s22  ;;  %v102_v57 = vpop.f32.mrf.mxu0 }
 0x354   :  { %v103_v58 = vadd.f32 %v1802_v8, %v102_v57 }
 0x358   :  { %v272_v39 = vpop.permute.xlu0 %271 }
 0x359   :  { %v277_v29 = vpop.permute.xlu1 %276  ;;  %v274_v40 = vmul.f32 %v272_v39, %v267_v28 }
 0x35a   :  { %v279_v30 = vmul.f32 %v277_v29, %v267_v28 }
 0x35c   :  { %281 = vrot.lane.b32.xlu1 %v279_v30, %s1681_s22 }
 0x3ad   :  { %v349_v32 = vpop.permute.xlu2 %348 }
 0x3ae   :  { %v1935_v34 = vadd.f32 %v349_v32, %v341_v31 }
 0x3b0   :  { %1494 = vtanh.f32 %v1935_v34 }
 0x3b6   :  { %v1495_v38 = vpop.eup %1494 }
 0x3b7   :  { %354 = vrot.lane.b32.xlu2 %v1495_v38, %s1680_s19 }
 0x3ce   :  { %v282_v43 = vpop.permute.xlu1 %281 }
 0x3cf   :  { %v1939_v47 = vadd.f32 %v282_v43, %v274_v40 }
 0x3d1   :  { %1496 = vtanh.f32 %v1939_v47 }
 0x3d7   :  { %v1497_v48 = vpop.eup %1496 }
 0x3d8   :  { %287 = vrot.lane.b32.xlu0 %v1497_v48, %s1680_s19 }
 0x411   :  { %v355_v49 = vpop.permute.xlu2 %354 }
 0x412   :  { %v357_v33 = vmul.f32 %v355_v49, %v338_v21 }
 0x414   :  { %359 = vrot.lane.b32.xlu1 %v357_v33, %s1681_s22 }
 0x44a   :  { %v288_v50 = vpop.permute.xlu0 %287 }
 0x44b   :  { %v1944_v51 = vmul.f32 %v288_v50, %v267_v28 }
 0x44d   :  { %362 = vrot.lane.b32.xlu2 %v1944_v51, %s1680_s19 }
 0x486   :  { %v360_v53 = vpop.permute.xlu1 %359 }
 0x487   :  { %1423 = vmatmul.msk.f32.vlgmr.msrb.gmra.mxu3 %vm151_vm1, %v360_v53 }
 0x488   :  { %720 = vmatpush.msrb.mxu3 %v1756_v0 }
 0x48a   :  { %721 = vmatpush.msrb.mxu3 %v1764_v2 }
 0x48c   :  { %722 = vmatpush.msrb.mxu3 %v1776_v5 }
 0x48e   :  { %723 = vmatpush.msrb.mxu3 %v1784_v6 }
 0x4a7   :  { %v363_v55 = vpop.permute.xlu2 %362 }
 0x4a8   :  { %v365_v56 = vsel %vm151_vm1, %v360_v53, %v363_v55 }
 0x4a9   :  { %1421 = vmatmul.msk.f32.vlgmr.msrb.gmra.mxu1 %vm226_vm6, %v365_v56 }
 0x4aa   :  { %921 = vmatpush.msrb.mxu1 %v1818_v35 }
 0x4ac   :  { %922 = vmatpush.msrb.mxu1 %v1823_v36 }
 0x4ae   :  { %923 = vmatpush.msrb.mxu1 %v1830_v37 }
 0x4b0   :  { %924 = vmatpush.msrb.mxu1 %v1847_v41 }
 0x4b2   :  { %925 = vmatpush.msrb.mxu1 %v1853_v42 }
 0x4b4   :  { %926 = vmatpush.msrb.mxu1 %v1863_v44 }
 0x4b6   :  { %927 = vmatpush.msrb.mxu1 %v1870_v45 }
 0x4b8   :  { %928 = vmatpush.msrb.mxu1 %v1881_v46 }
 0x50a   :  { %v453_v59 = vpop.f32.mrf.mxu3 }
 0x50b   :  { %v456_v60 = vadd.f32 %v453_v59, %v103_v58 }
 0x50d   :  { %1498 = vtanh.f32 %v456_v60  ;;  %v1424_v3 = vmul.f32 -1.442695, %v456_v60 }
 0x513   :  { %v1499_v61 = vpop.eup %1498 }
 0x514   :  { %479 = vrot.lane.b32.xlu0 %v1499_v61, %s1680_s19 }
 0x526   :  { %v386_v62 = vpop.f32.mrf.mxu1 }
 0x527   :  { %v387_v63 = vadd.f32 %v1923_v54, %v386_v62 }
 0x529   :  { %1500 = vtanh.f32 %v387_v63  ;;  %v1422_v11 = vmul.f32 -1.442695, %v387_v63 }
 0x52a   :  { %1502 = vpow2.f32 %v1424_v3 }
 0x52f   :  { %v1501_v1 = vpop.eup %1500 }
 0x530   :  { %411 = vrot.lane.b32.xlu1 %v1501_v1, %s1680_s19  ;;  %v1503_v4 = vpop.eup %1502 }
 0x531   :  { %v460_v7 = vadd.f32 1.0, %v1503_v4 }
 0x533   :  { %1504 = vrcp.f32 %v460_v7  ;;  %v472_v16 = vand.u32 2147483648, %v460_v7  ;;  %vm466_vm2 = vweird.f32 %v460_v7  ;;  %v470_v17 = vand.u32 2147483647, %v460_v7 }
 0x534   :  { %1506 = vpow2.f32 %v1422_v11 }
 0x535   :  { %v473_v20 = vor.u32 1.1754944e-38, %v472_v16  ;;  %vm471_vm4 = vcmp.eq.f32.partialorder %v470_v17, 8.507059e+37 }
 0x539   :  { %v1505_v9 = vpop.eup %1504 }
 0x53a   :  { %v462_v10 = vmul.f32 %v1505_v9, %v460_v7  ;;  %v1507_v14 = vpop.eup %1506  ;;  %vm467_vm15 = vweird.f32 %v1505_v9 }
 0x53b   :  { %v392_v18 = vadd.f32 1.0, %v1507_v14  ;;  %vm468_vm3 = vmor %vm466_vm2, %vm467_vm15 }
 0x53c   :  { %v463_v12 = vsub.f32 1.0, %v462_v10 }
 0x53d   :  { %1508 = vrcp.f32 %v392_v18  ;;  %v404_v29 = vand.u32 2147483648, %v392_v18  ;;  %vm398_vm7 = vweird.f32 %v392_v18  ;;  %v402_v30 = vand.u32 2147483647, %v392_v18 }
 0x53e   :  { %v464_v13 = vmul.f32 %v1505_v9, %v463_v12 }
 0x53f   :  { %v405_v32 = vor.u32 1.1754944e-38, %v404_v29  ;;  %vm403_vm9 = vcmp.eq.f32.partialorder %v402_v30, 8.507059e+37 }
 0x540   :  { %v465_v15 = vadd.f32 %v1505_v9, %v464_v13 }
 0x542   :  { %v469_v19 = vsel %vm468_vm3, %v1505_v9, %v465_v15 }
 0x543   :  { %v474_v22 = vsel %vm471_vm4, %v473_v20, %v469_v19  ;;  %v1509_v24 = vpop.eup %1508 }
 0x544   :  { %v394_v25 = vmul.f32 %v1509_v24, %v392_v18  ;;  %vm399_vm5 = vweird.f32 %v1509_v24  ;;  %v477_v43 = vmul.f32 %v474_v22, %v1935_v34 }
 0x545   :  { %vm400_vm8 = vmor %vm398_vm7, %vm399_vm5 }
 0x546   :  { %v395_v26 = vsub.f32 1.0, %v394_v25 }
 0x548   :  { %v396_v27 = vmul.f32 %v1509_v24, %v395_v26 }
 0x54a   :  { %v397_v28 = vadd.f32 %v1509_v24, %v396_v27 }
 0x54c   :  { %v401_v31 = vsel %vm400_vm8, %v1509_v24, %v397_v28 }
 0x54d   :  { %v406_v39 = vsel %vm403_vm9, %v405_v32, %v401_v31 }
 0x54e   :  { %v409_v50 = vmul.f32 %v406_v39, %v1939_v47  ;;  %v43_v47 = vld [vmem:[%s2239_s0 + $0x18] sm:$0xff] }
 0x54f   :  { %1408 = vmatmul.msk.f32.gmra.mxu0 %vm54_vm0, %v43_v47 }
 0x586   :  { %v480_v21 = vpop.permute.xlu0 %479 }
 0x587   :  { %v482_v23 = vmul.f32 %v480_v21, %v474_v22 }
 0x589   :  { %484 = vrot.lane.b32.xlu2 %v482_v23, %s1681_s22 }
 0x5a2   :  { %v412_v38 = vpop.permute.xlu1 %411 }
 0x5a3   :  { %v414_v40 = vmul.f32 %v412_v38, %v406_v39 }
 0x5a5   :  { %416 = vrot.lane.b32.xlu0 %v414_v40, %s1681_s22 }
 0x5cc   :  { %v105_v62 = vpop.f32.mrf.mxu0 }
 0x5cd   :  { %v106_v63 = vadd.f32 %v1802_v8, %v105_v62 }
 0x5e3   :  { %v485_v48 = vpop.permute.xlu2 %484 }
 0x5e4   :  { %v1974_v49 = vadd.f32 %v485_v48, %v477_v43 }
 0x5e6   :  { %1510 = vtanh.f32 %v1974_v49 }
 0x5ec   :  { %v1511_v33 = vpop.eup %1510 }
 0x5ed   :  { %490 = vrot.lane.b32.xlu1 %v1511_v33, %s1680_s19 }
 0x617   :  { %v417_v52 = vpop.permute.xlu0 %416 }
 0x618   :  { %v1979_v53 = vadd.f32 %v417_v52, %v409_v50 }
 0x61a   :  { %1512 = vtanh.f32 %v1979_v53 }
 0x620   :  { %v1513_v55 = vpop.eup %1512 }
 0x621   :  { %422 = vrot.lane.b32.xlu2 %v1513_v55, %s1680_s19 }
 0x65f   :  { %v491_v56 = vpop.permute.xlu1 %490 }
 0x660   :  { %v493_v34 = vmul.f32 %v491_v56, %v474_v22 }
 0x662   :  { %495 = vrot.lane.b32.xlu0 %v493_v34, %s1681_s22 }
 0x67b   :  { %v423_v57 = vpop.permute.xlu2 %422 }
 0x67c   :  { %v1984_v58 = vmul.f32 %v423_v57, %v406_v39 }
 0x67e   :  { %498 = vrot.lane.b32.xlu1 %v1984_v58, %s1680_s19 }
 0x6d4   :  { %v496_v59 = vpop.permute.xlu0 %495 }
 0x6d5   :  { %1427 = vmatmul.msk.f32.vlgmr.msra.gmra.mxu3 %vm151_vm1, %v496_v59 }
 0x6d6   :  { %856 = vmatpush.msra.mxu3 %v1756_v0 }
 0x6d8   :  { %857 = vmatpush.msra.mxu3 %v1764_v2 }
 0x6da   :  { %858 = vmatpush.msra.mxu3 %v1776_v5 }
 0x6dc   :  { %859 = vmatpush.msra.mxu3 %v1784_v6 }
 0x6f0   :  { %v499_v60 = vpop.permute.xlu1 %498 }
 0x6f1   :  { %v501_v61 = vsel %vm151_vm1, %v496_v59, %v499_v60 }
 0x6f2   :  { %1425 = vmatmul.msk.f32.vlgmr.msrb.gmra.mxu2 %vm226_vm6, %v501_v61 }
 0x6f3   :  { %1057 = vmatpush.msrb.mxu2 %v1818_v35 }
 0x6f5   :  { %1058 = vmatpush.msrb.mxu2 %v1823_v36 }
 0x6f7   :  { %1059 = vmatpush.msrb.mxu2 %v1830_v37 }
 0x6f9   :  { %1060 = vmatpush.msrb.mxu2 %v1847_v41 }
 0x6fb   :  { %1061 = vmatpush.msrb.mxu2 %v1853_v42 }
 0x6fd   :  { %1062 = vmatpush.msrb.mxu2 %v1863_v44 }
 0x6ff   :  { %1063 = vmatpush.msrb.mxu2 %v1870_v45 }
 0x701   :  { %1064 = vmatpush.msrb.mxu2 %v1881_v46 }
 0x758   :  { %v589_v1 = vpop.f32.mrf.mxu3 }
 0x759   :  { %v592_v3 = vadd.f32 %v589_v1, %v106_v63 }
 0x75b   :  { %1514 = vtanh.f32 %v592_v3  ;;  %v1428_v42 = vmul.f32 -1.442695, %v592_v3 }
 0x761   :  { %v1515_v35 = vpop.eup %1514 }
 0x762   :  { %615 = vrot.lane.b32.xlu2 %v1515_v35, %s1680_s19 }
 0x775   :  { %v522_v36 = vpop.f32.mrf.mxu2 }
 0x776   :  { %v523_v37 = vadd.f32 %v1923_v54, %v522_v36 }
 0x778   :  { %1516 = vtanh.f32 %v523_v37  ;;  %v1426_v18 = vmul.f32 -1.442695, %v523_v37 }
 0x779   :  { %1518 = vpow2.f32 %v1428_v42 }
 0x77e   :  { %v1517_v41 = vpop.eup %1516 }
 0x77f   :  { %547 = vrot.lane.b32.xlu0 %v1517_v41, %s1680_s19  ;;  %v1519_v44 = vpop.eup %1518 }
 0x780   :  { %v596_v45 = vadd.f32 1.0, %v1519_v44 }
 0x782   :  { %1520 = vrcp.f32 %v596_v45  ;;  %v608_v11 = vand.u32 2147483648, %v596_v45  ;;  %vm602_vm11 = vweird.f32 %v596_v45  ;;  %v606_v12 = vand.u32 2147483647, %v596_v45 }
 0x783   :  { %1522 = vpow2.f32 %v1426_v18 }
 0x784   :  { %v609_v14 = vor.u32 1.1754944e-38, %v608_v11  ;;  %vm607_vm13 = vcmp.eq.f32.partialorder %v606_v12, 8.507059e+37 }
 0x788   :  { %v1521_v46 = vpop.eup %1520 }
 0x789   :  { %v598_v4 = vmul.f32 %v1521_v46, %v596_v45  ;;  %vm603_vm10 = vweird.f32 %v1521_v46  ;;  %v1523_v19 = vpop.eup %1522 }
 0x78a   :  { %vm604_vm12 = vmor %vm602_vm11, %vm603_vm10  ;;  %v528_v20 = vadd.f32 1.0, %v1523_v19 }
 0x78b   :  { %v599_v7 = vsub.f32 1.0, %v598_v4 }
 0x78c   :  { %1524 = vrcp.f32 %v528_v20  ;;  %v540_v26 = vand.u32 2147483648, %v528_v20  ;;  %vm534_vm15 = vweird.f32 %v528_v20  ;;  %v538_v27 = vand.u32 2147483647, %v528_v20 }
 0x78d   :  { %v600_v9 = vmul.f32 %v1521_v46, %v599_v7 }
 0x78e   :  { %v541_v29 = vor.u32 1.1754944e-38, %v540_v26  ;;  %vm539_vm3 = vcmp.eq.f32.partialorder %v538_v27, 8.507059e+37 }
 0x78f   :  { %v601_v10 = vadd.f32 %v1521_v46, %v600_v9 }
 0x791   :  { %v605_v13 = vsel %vm604_vm12, %v1521_v46, %v601_v10 }
 0x792   :  { %v610_v15 = vsel %vm607_vm13, %v609_v14, %v605_v13  ;;  %v1525_v21 = vpop.eup %1524 }
 0x793   :  { %v530_v22 = vmul.f32 %v1525_v21, %v528_v20  ;;  %vm535_vm14 = vweird.f32 %v1525_v21  ;;  %v613_v38 = vmul.f32 %v610_v15, %v1974_v49 }
 0x794   :  { %vm536_vm2 = vmor %vm534_vm15, %vm535_vm14 }
 0x795   :  { %v531_v23 = vsub.f32 1.0, %v530_v22 }
 0x797   :  { %v532_v24 = vmul.f32 %v1525_v21, %v531_v23 }
 0x799   :  { %v533_v25 = vadd.f32 %v1525_v21, %v532_v24 }
 0x79b   :  { %v537_v28 = vsel %vm536_vm2, %v1525_v21, %v533_v25 }
 0x79c   :  { %v542_v31 = vsel %vm539_vm3, %v541_v29, %v537_v28 }
 0x79d   :  { %v545_v48 = vmul.f32 %v542_v31, %v1979_v53  ;;  %v44_v53 = vld [vmem:[%s2239_s0 + $0x20] sm:$0xff] }
 0x79e   :  { %1409 = vmatmul.msk.f32.gmra.mxu0 %vm54_vm0, %v44_v53 }
 0x7bc   :  { %v616_v16 = vpop.permute.xlu2 %615 }
 0x7bd   :  { %v618_v17 = vmul.f32 %v616_v16, %v610_v15 }
 0x7bf   :  { %620 = vrot.lane.b32.xlu1 %v618_v17, %s1681_s22 }
 0x7f1   :  { %v548_v30 = vpop.permute.xlu0 %547 }
 0x7f2   :  { %v550_v32 = vmul.f32 %v548_v30, %v542_v31 }
 0x7f4   :  { %552 = vrot.lane.b32.xlu2 %v550_v32, %s1681_s22 }
 0x81b   :  { %v108_v60 = vpop.f32.mrf.mxu0 }
 0x81c   :  { %v109_v61 = vadd.f32 %v1802_v8, %v108_v60 }
 0x831   :  { %v621_v39 = vpop.permute.xlu1 %620 }
 0x832   :  { %v2014_v40 = vadd.f32 %v621_v39, %v613_v38 }
 0x834   :  { %1526 = vtanh.f32 %v2014_v40 }
 0x83a   :  { %v1527_v43 = vpop.eup %1526 }
 0x83b   :  { %626 = vrot.lane.b32.xlu0 %v1527_v43, %s1680_s19 }
 0x84e   :  { %v553_v33 = vpop.permute.xlu2 %552 }
 0x84f   :  { %v2019_v50 = vadd.f32 %v553_v33, %v545_v48 }
 0x851   :  { %1528 = vtanh.f32 %v2019_v50 }
 0x857   :  { %v1529_v52 = vpop.eup %1528 }
 0x858   :  { %558 = vrot.lane.b32.xlu1 %v1529_v52, %s1680_s19 }
 0x8ad   :  { %v627_v55 = vpop.permute.xlu0 %626 }
 0x8ae   :  { %v629_v49 = vmul.f32 %v627_v55, %v610_v15 }
 0x8b0   :  { %631 = vrot.lane.b32.xlu2 %v629_v49, %s1681_s22 }
 0x8ca   :  { %v559_v56 = vpop.permute.xlu1 %558 }
 0x8cb   :  { %v2024_v34 = vmul.f32 %v559_v56, %v542_v31 }
 0x8cd   :  { %634 = vrot.lane.b32.xlu0 %v2024_v34, %s1680_s19 }
 0x90a   :  { %v632_v57 = vpop.permute.xlu2 %631 }
 0x90b   :  { %1431 = vmatmul.msk.f32.vlgmr.msrb.gmra.mxu3 %vm151_vm1, %v632_v57 }
 0x90c   :  { %992 = vmatpush.msrb.mxu3 %v1756_v0 }
 0x90e   :  { %993 = vmatpush.msrb.mxu3 %v1764_v2 }
 0x910   :  { %994 = vmatpush.msrb.mxu3 %v1776_v5 }
 0x912   :  { %995 = vmatpush.msrb.mxu3 %v1784_v6 }
 0x93f   :  { %v635_v47 = vpop.permute.xlu0 %634 }
 0x940   :  { %v637_v59 = vsel %vm151_vm1, %v632_v57, %v635_v47 }
 0x941   :  { %1429 = vmatmul.msk.f32.vlgmr.msra.gmra.mxu1 %vm226_vm6, %v637_v59 }
 0x98e   :  { %v725_v62 = vpop.f32.mrf.mxu3 }
 0x98f   :  { %v728_v63 = vadd.f32 %v725_v62, %v109_v61 }
 0x991   :  { %1530 = vtanh.f32 %v728_v63  ;;  %v1432_v37 = vmul.f32 -1.442695, %v728_v63 }
 0x997   :  { %v1531_v1 = vpop.eup %1530 }
 0x998   :  { %751 = vrot.lane.b32.xlu1 %v1531_v1, %s1680_s19 }
 0x9be   :  { %v658_v3 = vpop.f32.mrf.mxu1 }
 0x9bf   :  { %v659_v35 = vadd.f32 %v1923_v54, %v658_v3 }
 0x9c1   :  { %1532 = vtanh.f32 %v659_v35  ;;  %v1430_v45 = vmul.f32 -1.442695, %v659_v35 }
 0x9c2   :  { %1534 = vpow2.f32 %v1432_v37 }
 0x9c7   :  { %v1533_v36 = vpop.eup %1532 }
 0x9c8   :  { %683 = vrot.lane.b32.xlu2 %v1533_v36, %s1680_s19  ;;  %v1535_v41 = vpop.eup %1534 }
 0x9c9   :  { %v732_v42 = vadd.f32 1.0, %v1535_v41 }
 0x9cb   :  { %1536 = vrcp.f32 %v732_v42  ;;  %v744_v12 = vand.u32 2147483648, %v732_v42  ;;  %vm738_vm5 = vweird.f32 %v732_v42  ;;  %v742_v13 = vand.u32 2147483647, %v732_v42 }
 0x9cc   :  { %1538 = vpow2.f32 %v1430_v45 }
 0x9cd   :  { %v745_v15 = vor.u32 1.1754944e-38, %v744_v12  ;;  %vm743_vm8 = vcmp.eq.f32.partialorder %v742_v13, 8.507059e+37 }
 0x9d1   :  { %v1537_v44 = vpop.eup %1536 }
 0x9d2   :  { %v734_v46 = vmul.f32 %v1537_v44, %v732_v42  ;;  %v1539_v7 = vpop.eup %1538  ;;  %vm739_vm4 = vweird.f32 %v1537_v44 }
 0x9d3   :  { %v664_v10 = vadd.f32 1.0, %v1539_v7  ;;  %vm740_vm7 = vmor %vm738_vm5, %vm739_vm4 }
 0x9d4   :  { %v735_v4 = vsub.f32 1.0, %v734_v46 }
 0x9d5   :  { %1540 = vrcp.f32 %v664_v10  ;;  %v676_v24 = vand.u32 2147483648, %v664_v10  ;;  %vm670_vm10 = vweird.f32 %v664_v10  ;;  %v674_v25 = vand.u32 2147483647, %v664_v10 }
 0x9d6   :  { %v736_v9 = vmul.f32 %v1537_v44, %v735_v4 }
 0x9d7   :  { %v677_v27 = vor.u32 1.1754944e-38, %v676_v24  ;;  %vm675_vm12 = vcmp.eq.f32.partialorder %v674_v25, 8.507059e+37 }
 0x9d8   :  { %v737_v11 = vadd.f32 %v1537_v44, %v736_v9 }
 0x9da   :  { %v741_v14 = vsel %vm740_vm7, %v1537_v44, %v737_v11 }
 0x9db   :  { %v746_v17 = vsel %vm743_vm8, %v745_v15, %v741_v14  ;;  %v1541_v19 = vpop.eup %1540 }
 0x9dc   :  { %v666_v20 = vmul.f32 %v1541_v19, %v664_v10  ;;  %vm671_vm9 = vweird.f32 %v1541_v19  ;;  %v749_v31 = vmul.f32 %v746_v17, %v2014_v40 }
 0x9dd   :  { %vm672_vm11 = vmor %vm670_vm10, %vm671_vm9 }
 0x9de   :  { %v667_v21 = vsub.f32 1.0, %v666_v20 }
 0x9e0   :  { %v668_v22 = vmul.f32 %v1541_v19, %v667_v21 }
 0x9e2   :  { %v669_v23 = vadd.f32 %v1541_v19, %v668_v22 }
 0x9e4   :  { %v673_v26 = vsel %vm672_vm11, %v1541_v19, %v669_v23 }
 0x9e5   :  { %v678_v29 = vsel %vm675_vm12, %v677_v27, %v673_v26 }
 0x9e6   :  { %v681_v43 = vmul.f32 %v678_v29, %v2019_v50  ;;  %v45_v50 = vld [vmem:[%s2239_s0 + $0x28] sm:$0xff] }
 0x9e7   :  { %1410 = vmatmul.msk.f32.gmra.mxu0 %vm54_vm0, %v45_v50  ;;  %v2102_v50 = vld [vmem:[%s2244_s5] ss:$0 sm:$0xff] }
 0xa0a   :  { %v752_v16 = vpop.permute.xlu1 %751 }
 0xa0b   :  { %v754_v18 = vmul.f32 %v752_v16, %v746_v17 }
 0xa0d   :  { %756 = vrot.lane.b32.xlu0 %v754_v18, %s1681_s22 }
 0xa22   :  { %v684_v28 = vpop.permute.xlu2 %683 }
 0xa23   :  { %v686_v30 = vmul.f32 %v684_v28, %v678_v29 }
 0xa25   :  { %688 = vrot.lane.b32.xlu1 %v686_v30, %s1681_s22 }
 0xa64   :  { %v111_v59 = vpop.f32.mrf.mxu0 }
 0xa65   :  { %v112_v60 = vadd.f32 %v1802_v8, %v111_v59 }
 0xa7f   :  { %v757_v32 = vpop.permute.xlu0 %756 }
 0xa80   :  { %v2046_v38 = vadd.f32 %v757_v32, %v749_v31 }
 0xa82   :  { %1542 = vtanh.f32 %v2046_v38 }
 0xa88   :  { %v1543_v39 = vpop.eup %1542 }
 0xa89   :  { %762 = vrot.lane.b32.xlu2 %v1543_v39, %s1680_s19 }
 0xa97   :  { %v689_v48 = vpop.permute.xlu1 %688 }
 0xa98   :  { %v2051_v33 = vadd.f32 %v689_v48, %v681_v43 }
 0xa9a   :  { %1544 = vtanh.f32 %v2051_v33 }
 0xaa0   :  { %v1545_v52 = vpop.eup %1544 }
 0xaa1   :  { %694 = vrot.lane.b32.xlu0 %v1545_v52, %s1680_s19 }
 0xae3   :  { %v763_v55 = vpop.permute.xlu2 %762 }
 0xae4   :  { %v765_v40 = vmul.f32 %v763_v55, %v746_v17 }
 0xae6   :  { %767 = vrot.lane.b32.xlu1 %v765_v40, %s1681_s22 }
 0xb13   :  { %v695_v49 = vpop.permute.xlu0 %694 }
 0xb14   :  { %v2056_v56 = vmul.f32 %v695_v49, %v678_v29 }
 0xb16   :  { %770 = vrot.lane.b32.xlu2 %v2056_v56, %s1680_s19 }
 0xb58   :  { %v768_v53 = vpop.permute.xlu1 %767 }
 0xb59   :  { %1435 = vmatmul.msk.f32.vlgmr.msra.gmra.mxu3 %vm151_vm1, %v768_v53 }
 0xb5a   :  { %1128 = vmatpush.msra.mxu3 %v1756_v0 }
 0xb5c   :  { %1129 = vmatpush.msra.mxu3 %v1764_v2 }
 0xb5e   :  { %1130 = vmatpush.msra.mxu3 %v1776_v5 }
 0xb60   :  { %1131 = vmatpush.msra.mxu3 %v1784_v6 }
 0xb70   :  { %v771_v57 = vpop.permute.xlu2 %770 }
 0xb71   :  { %v773_v47 = vsel %vm151_vm1, %v768_v53, %v771_v57 }
 0xb72   :  { %1433 = vmatmul.msk.f32.vlgmr.msra.gmra.mxu2 %vm226_vm6, %v773_v47 }
 0xbdc   :  { %v861_v61 = vpop.f32.mrf.mxu3 }
 0xbdd   :  { %v864_v62 = vadd.f32 %v861_v61, %v112_v60 }
 0xbdf   :  { %1546 = vtanh.f32 %v864_v62  ;;  %v1436_v6 = vmul.f32 -1.442695, %v864_v62 }
 0xbe5   :  { %v1547_v63 = vpop.eup %1546 }
 0xbe6   :  { %887 = vrot.lane.b32.xlu0 %v1547_v63, %s1680_s19 }
 0xbf5   :  { %v794_v0 = vpop.f32.mrf.mxu2 }
 0xbf6   :  { %v795_v2 = vadd.f32 %v1923_v54, %v794_v0 }
 0xbf8   :  { %1548 = vtanh.f32 %v795_v2  ;;  %v1434_v8 = vmul.f32 -1.442695, %v795_v2 }
 0xbf9   :  { %1550 = vpow2.f32 %v1436_v6 }
 0xbfe   :  { %v1549_v5 = vpop.eup %1548 }
 0xbff   :  { %819 = vrot.lane.b32.xlu1 %v1549_v5, %s1680_s19  ;;  %v1551_v1 = vpop.eup %1550 }
 0xc00   :  { %v868_v3 = vadd.f32 1.0, %v1551_v1 }
 0xc02   :  { %1552 = vrcp.f32 %v868_v3  ;;  %v880_v46 = vand.u32 2147483648, %v868_v3  ;;  %vm874_vm14 = vweird.f32 %v868_v3  ;;  %v878_v4 = vand.u32 2147483647, %v868_v3 }
 0xc03   :  { %1554 = vpow2.f32 %v1434_v8 }
 0xc04   :  { %v881_v9 = vor.u32 1.1754944e-38, %v880_v46  ;;  %vm879_vm2 = vcmp.eq.f32.partialorder %v878_v4, 8.507059e+37 }
 0xc08   :  { %v1553_v35 = vpop.eup %1552 }
 0xc09   :  { %v870_v36 = vmul.f32 %v1553_v35, %v868_v3  ;;  %v1555_v42 = vpop.eup %1554  ;;  %vm875_vm13 = vweird.f32 %v1553_v35 }
 0xc0a   :  { %v800_v44 = vadd.f32 1.0, %v1555_v42  ;;  %vm876_vm15 = vmor %vm874_vm14, %vm875_vm13 }
 0xc0b   :  { %v871_v37 = vsub.f32 1.0, %v870_v36 }
 0xc0c   :  { %1556 = vrcp.f32 %v800_v44  ;;  %v812_v18 = vand.u32 2147483648, %v800_v44  ;;  %vm806_vm4 = vweird.f32 %v800_v44  ;;  %v810_v19 = vand.u32 2147483647, %v800_v44 }
 0xc0d   :  { %v872_v41 = vmul.f32 %v1553_v35, %v871_v37 }
 0xc0e   :  { %v813_v21 = vor.u32 1.1754944e-38, %v812_v18  ;;  %vm811_vm7 = vcmp.eq.f32.partialorder %v810_v19, 8.507059e+37 }
 0xc0f   :  { %v873_v45 = vadd.f32 %v1553_v35, %v872_v41 }
 0xc11   :  { %v877_v7 = vsel %vm876_vm15, %v1553_v35, %v873_v45 }
 0xc12   :  { %v882_v10 = vsel %vm879_vm2, %v881_v9, %v877_v7  ;;  %v1557_v13 = vpop.eup %1556 }
 0xc13   :  { %v802_v14 = vmul.f32 %v1557_v13, %v800_v44  ;;  %vm807_vm3 = vweird.f32 %v1557_v13  ;;  %v885_v25 = vmul.f32 %v882_v10, %v2046_v38 }
 0xc14   :  { %vm808_vm5 = vmor %vm806_vm4, %vm807_vm3 }
 0xc15   :  { %v803_v15 = vsub.f32 1.0, %v802_v14 }
 0xc17   :  { %v804_v16 = vmul.f32 %v1557_v13, %v803_v15 }
 0xc19   :  { %v805_v17 = vadd.f32 %v1557_v13, %v804_v16 }
 0xc1b   :  { %v809_v20 = vsel %vm808_vm5, %v1557_v13, %v805_v17 }
 0xc1c   :  { %v814_v23 = vsel %vm811_vm7, %v813_v21, %v809_v20 }
 0xc1d   :  { %v817_v29 = vmul.f32 %v814_v23, %v2051_v33  ;;  %v46_v33 = vld [vmem:[%s2239_s0 + $0x30] sm:$0xff] }
 0xc1e   :  { %1411 = vmatmul.msk.f32.gmra.mxu0 %vm54_vm0, %v46_v33 }
 0xc58   :  { %v888_v11 = vpop.permute.xlu0 %887 }
 0xc59   :  { %v890_v12 = vmul.f32 %v888_v11, %v882_v10 }
 0xc5b   :  { %892 = vrot.lane.b32.xlu2 %v890_v12, %s1681_s22 }
 0xc71   :  { %v820_v22 = vpop.permute.xlu1 %819 }
 0xc72   :  { %v822_v24 = vmul.f32 %v820_v22, %v814_v23 }
 0xc74   :  { %824 = vrot.lane.b32.xlu0 %v822_v24, %s1681_s22 }
 0xc9b   :  { %v114_v49 = vpop.f32.mrf.mxu0 }
 0xc9c   :  { %v115_v53 = vadd.f32 %v2102_v50, %v114_v49 }
 0xcb5   :  { %v893_v26 = vpop.permute.xlu2 %892 }
 0xcb6   :  { %v2078_v27 = vadd.f32 %v893_v26, %v885_v25 }
 0xcb8   :  { %1558 = vtanh.f32 %v2078_v27 }
 0xcbe   :  { %v1559_v28 = vpop.eup %1558 }
 0xcbf   :  { %898 = vrot.lane.b32.xlu1 %v1559_v28, %s1680_s19 }
 0xce6   :  { %v825_v30 = vpop.permute.xlu0 %824 }
 0xce7   :  { %v2083_v31 = vadd.f32 %v825_v30, %v817_v29 }
 0xce9   :  { %1560 = vtanh.f32 %v2083_v31 }
 0xcef   :  { %v1561_v32 = vpop.eup %1560 }
 0xcf0   :  { %830 = vrot.lane.b32.xlu2 %v1561_v32, %s1680_s19 }
 0xd31   :  { %v899_v39 = vpop.permute.xlu1 %898 }
 0xd32   :  { %v901_v38 = vmul.f32 %v899_v39, %v882_v10 }
 0xd34   :  { %903 = vrot.lane.b32.xlu0 %v901_v38, %s1681_s22 }
 0xd4a   :  { %v831_v43 = vpop.permute.xlu2 %830 }
 0xd4b   :  { %v2088_v48 = vmul.f32 %v831_v43, %v814_v23 }
 0xd4d   :  { %906 = vrot.lane.b32.xlu1 %v2088_v48, %s1680_s19 }
 0xda6   :  { %v904_v52 = vpop.permute.xlu0 %903 }
 0xda7   :  { %1439 = vmatmul.msk.f32.vlgmr.msrb.gmra.mxu3 %vm151_vm1, %v904_v52 }
 0xdbf   :  { %v907_v55 = vpop.permute.xlu1 %906 }
 0xdc0   :  { %v909_v40 = vsel %vm151_vm1, %v904_v52, %v907_v55 }
 0xdc1   :  { %1437 = vmatmul.msk.f32.vlgmr.msrb.gmra.mxu1 %vm226_vm6, %v909_v40 }
 0xe2a   :  { %v997_v57 = vpop.f32.mrf.mxu3 }
 0xe2b   :  { %v1000_v47 = vadd.f32 %v997_v57, %v115_v53  ;;  %v2137_v57 = vld [vmem:[%s2246_s7] ss:$0 sm:$0xff] }
 0xe2d   :  { %1562 = vtanh.f32 %v1000_v47  ;;  %v1440_v0 = vmul.f32 -1.442695, %v1000_v47 }
 0xe33   :  { %v1563_v59 = vpop.eup %1562 }
 0xe34   :  { %1023 = vrot.lane.b32.xlu0 %v1563_v59, %s1680_s19 }
 0xe3e   :  { %v930_v60 = vpop.f32.mrf.mxu1 }
 0xe3f   :  { %v931_v61 = vadd.f32 %v1923_v54, %v930_v60 }
 0xe41   :  { %1564 = vtanh.f32 %v931_v61  ;;  %v1438_v63 = vmul.f32 -1.442695, %v931_v61 }
 0xe43   :  { %1566 = vpow2.f32 %v1438_v63 }
 0xe44   :  { %1568 = vpow2.f32 %v1440_v0 }
 0xe47   :  { %v1565_v62 = vpop.eup %1564 }
 0xe48   :  { %955 = vrot.lane.b32.xlu2 %v1565_v62, %s1680_s19 }
 0xe49   :  { %v1567_v2 = vpop.eup %1566 }
 0xe4a   :  { %v936_v5 = vadd.f32 1.0, %v1567_v2  ;;  %v1569_v6 = vpop.eup %1568 }
 0xe4b   :  { %v1004_v1 = vadd.f32 1.0, %v1569_v6 }
 0xe4c   :  { %1570 = vrcp.f32 %v936_v5  ;;  %v948_v45 = vand.u32 2147483648, %v936_v5  ;;  %vm942_vm9 = vweird.f32 %v936_v5  ;;  %v946_v46 = vand.u32 2147483647, %v936_v5 }
 0xe4d   :  { %1572 = vrcp.f32 %v1004_v1  ;;  %v1016_v10 = vand.u32 2147483648, %v1004_v1  ;;  %vm1010_vm13 = vweird.f32 %v1004_v1  ;;  %v1014_v11 = vand.u32 2147483647, %v1004_v1 }
 0xe4e   :  { %v949_v9 = vor.u32 1.1754944e-38, %v948_v45  ;;  %vm947_vm12 = vcmp.eq.f32.partialorder %v946_v46, 8.507059e+37 }
 0xe4f   :  { %v1017_v16 = vor.u32 1.1754944e-38, %v1016_v10  ;;  %vm1015_vm15 = vcmp.eq.f32.partialorder %v1014_v11, 8.507059e+37 }
 0xe52   :  { %v1571_v3 = vpop.eup %1570 }
 0xe53   :  { %v938_v35 = vmul.f32 %v1571_v3, %v936_v5  ;;  %v1573_v8 = vpop.eup %1572  ;;  %vm943_vm8 = vweird.f32 %v1571_v3 }
 0xe54   :  { %v1006_v37 = vmul.f32 %v1573_v8, %v1004_v1  ;;  %vm944_vm10 = vmor %vm942_vm9, %vm943_vm8  ;;  %vm1011_vm11 = vweird.f32 %v1573_v8 }
 0xe55   :  { %v939_v36 = vsub.f32 1.0, %v938_v35  ;;  %vm1012_vm14 = vmor %vm1010_vm13, %vm1011_vm11  ;;  %vm1329_vm13 = vcmask 162816  }
 0xe56   :  { %v1007_v41 = vsub.f32 1.0, %v1006_v37 }
 0xe57   :  { %v940_v54 = vmul.f32 %v1571_v3, %v939_v36 }
 0xe58   :  { %v1008_v44 = vmul.f32 %v1573_v8, %v1007_v41 }
 0xe59   :  { %v941_v42 = vadd.f32 %v1571_v3, %v940_v54 }
 0xe5a   :  { %v1009_v7 = vadd.f32 %v1573_v8, %v1008_v44 }
 0xe5b   :  { %v945_v4 = vsel %vm944_vm10, %v1571_v3, %v941_v42 }
 0xe5c   :  { %v950_v13 = vsel %vm947_vm12, %v949_v9, %v945_v4  ;;  %v1013_v15 = vsel %vm1012_vm14, %v1573_v8, %v1009_v7 }
 0xe5d   :  { %v1018_v18 = vsel %vm1015_vm15, %v1017_v16, %v1013_v15  ;;  %v953_v24 = vmul.f32 %v950_v13, %v2083_v31  ;;  %v47_v31 = vld [vmem:[%s2239_s0 + $0x38] sm:$0xff]  ;;  %s1358_s0 = sshll.u32 %s2249_s10, 4  ;;  %s1359_s0 = int_to_ptr.hbm [resolvable:$true] %s1358_s0 }
 0xe5e   :  { %v1021_v20 = vmul.f32 %v1018_v18, %v2078_v27  ;;  %1412 = vmatmul.msk.f32.gmra.mxu0 %vm54_vm0, %v47_v31 }
 0xea2   :  { %v956_v12 = vpop.permute.xlu2 %955 }
 0xea3   :  { %v958_v14 = vmul.f32 %v956_v12, %v950_v13 }
 0xea5   :  { %960 = vrot.lane.b32.xlu1 %v958_v14, %s1681_s22 }
 0xea6   :  { %v1024_v17 = vpop.permute.xlu0 %1023 }
 0xea7   :  { %v1026_v19 = vmul.f32 %v1024_v17, %v1018_v18 }
 0xea9   :  { %1028 = vrot.lane.b32.xlu2 %v1026_v19, %s1681_s22 }
 0xedb   :  { %v117_v33 = vpop.f32.mrf.mxu0 }
 0xedc   :  { %v118_v52 = vadd.f32 %v2102_v50, %v117_v33 }
 0xf03   :  { %v1029_v21 = vpop.permute.xlu2 %1028 }
 0xf04   :  { %v2111_v22 = vadd.f32 %v1029_v21, %v1021_v20 }
 0xf06   :  { %1574 = vtanh.f32 %v2111_v22 }
 0xf0c   :  { %v1575_v23 = vpop.eup %1574 }
 0xf0d   :  { %1034 = vrot.lane.b32.xlu1 %v1575_v23, %s1680_s19 }
 0xf17   :  { %v961_v25 = vpop.permute.xlu1 %960 }
 0xf18   :  { %v2116_v26 = vadd.f32 %v961_v25, %v953_v24 }
 0xf1a   :  { %1576 = vtanh.f32 %v2116_v26 }
 0xf20   :  { %v1577_v28 = vpop.eup %1576 }
 0xf21   :  { %966 = vrot.lane.b32.xlu0 %v1577_v28, %s1680_s19 }
 0xf7f   :  { %v1035_v29 = vpop.permute.xlu1 %1034 }
 0xf80   :  { %v1037_v27 = vmul.f32 %v1035_v29, %v1018_v18 }
 0xf82   :  { %1039 = vrot.lane.b32.xlu2 %v1037_v27, %s1681_s22 }
 0xf93   :  { %v967_v30 = vpop.permute.xlu0 %966 }
 0xf94   :  { %v2121_v32 = vmul.f32 %v967_v30, %v950_v13 }
 0xf96   :  { %1042 = vrot.lane.b32.xlu0 %v2121_v32, %s1680_s19 }
 0xfdc   :  { %v1040_v39 = vpop.permute.xlu2 %1039 }
 0xfdd   :  { %1443 = vmatmul.msk.f32.vlgmr.msra.gmra.mxu3 %vm151_vm1, %v1040_v39 }
0x1008   :  { %v1043_v38 = vpop.permute.xlu0 %1042 }
0x1009   :  { %v1045_v43 = vsel %vm151_vm1, %v1040_v39, %v1043_v38 }
0x100a   :  { %1441 = vmatmul.msk.f32.vlgmr.msrb.gmra.mxu2 %vm226_vm6, %v1045_v43 }
0x1060   :  { %v1133_v55 = vpop.f32.mrf.mxu3 }
0x1061   :  { %v1136_v40 = vadd.f32 %v1133_v55, %v118_v52  ;;  %v1259_v55 = vld [vmem:[%s2247_s8 + $0x18] sm:$0xff] }
0x1062   :  { %1456 = vmatpush.msrb.mxu3 %v1259_v55  ;;  %1300 = vmatpush.msra.mxu1 %v1259_v55 }
0x1063   :  { %1578 = vtanh.f32 %v1136_v40  ;;  %v1444_v60 = vmul.f32 -1.442695, %v1136_v40  ;;  %1455 = vmatpush.msra.mxu2 %v1259_v55 }
0x1069   :  { %v1579_v49 = vpop.eup %1578 }
0x106a   :  { %1159 = vrot.lane.b32.xlu2 %v1579_v49, %s1680_s19  ;;  %v1258_v49 = vld [vmem:[%s2247_s8 + $0x10] sm:$0xff] }
0x106b   :  { %1458 = vmatpush.msrb.mxu3 %v1258_v49  ;;  %1301 = vmatpush.msra.mxu1 %v1258_v49 }
0x106c   :  { %1457 = vmatpush.msra.mxu2 %v1258_v49 }
0x108d   :  { %v1066_v53 = vpop.f32.mrf.mxu2 }
0x108e   :  { %v1067_v47 = vadd.f32 %v2137_v57, %v1066_v53 }
0x1090   :  { %1580 = vtanh.f32 %v1067_v47  ;;  %v1442_v54 = vmul.f32 -1.442695, %v1067_v47 }
0x1091   :  { %1582 = vpow2.f32 %v1444_v60 }
0x1096   :  { %v1581_v59 = vpop.eup %1580 }
0x1097   :  { %1091 = vrot.lane.b32.xlu1 %v1581_v59, %s1680_s19  ;;  %v1583_v50 = vpop.eup %1582 }
0x1098   :  { %v1140_v61 = vadd.f32 1.0, %v1583_v50 }
0x109a   :  { %1584 = vrcp.f32 %v1140_v61  ;;  %v1152_v6 = vand.u32 2147483648, %v1140_v61  ;;  %vm1146_vm2 = vweird.f32 %v1140_v61  ;;  %v1150_v1 = vand.u32 2147483647, %v1140_v61 }
0x109b   :  { %1586 = vpow2.f32 %v1442_v54 }
0x109c   :  { %v1153_v35 = vor.u32 1.1754944e-38, %v1152_v6  ;;  %vm1151_vm4 = vcmp.eq.f32.partialorder %v1150_v1, 8.507059e+37 }
0x10a0   :  { %v1585_v62 = vpop.eup %1584 }
0x10a1   :  { %v1142_v63 = vmul.f32 %v1585_v62, %v1140_v61  ;;  %vm1147_vm0 = vweird.f32 %v1585_v62  ;;  %v1587_v41 = vpop.eup %1586 }
0x10a2   :  { %vm1148_vm3 = vmor %vm1146_vm2, %vm1147_vm0  ;;  %v1072_v42 = vadd.f32 1.0, %v1587_v41 }
0x10a3   :  { %v1143_v0 = vsub.f32 1.0, %v1142_v63 }
0x10a4   :  { %1588 = vrcp.f32 %v1072_v42  ;;  %v1084_v9 = vand.u32 2147483648, %v1072_v42  ;;  %vm1078_vm7 = vweird.f32 %v1072_v42  ;;  %v1082_v10 = vand.u32 2147483647, %v1072_v42 }
0x10a5   :  { %v1144_v2 = vmul.f32 %v1585_v62, %v1143_v0 }
0x10a6   :  { %v1085_v12 = vor.u32 1.1754944e-38, %v1084_v9  ;;  %vm1083_vm9 = vcmp.eq.f32.partialorder %v1082_v10, 8.507059e+37 }
0x10a7   :  { %v1145_v5 = vadd.f32 %v1585_v62, %v1144_v2 }
0x10a9   :  { %v1149_v3 = vsel %vm1148_vm3, %v1585_v62, %v1145_v5 }
0x10aa   :  { %v1154_v36 = vsel %vm1151_vm4, %v1153_v35, %v1149_v3  ;;  %v1589_v44 = vpop.eup %1588 }
0x10ab   :  { %v1074_v45 = vmul.f32 %v1589_v44, %v1072_v42  ;;  %vm1079_vm5 = vweird.f32 %v1589_v44  ;;  %v1157_v16 = vmul.f32 %v1154_v36, %v2111_v22 }
0x10ac   :  { %vm1080_vm8 = vmor %vm1078_vm7, %vm1079_vm5 }
0x10ad   :  { %v1075_v46 = vsub.f32 1.0, %v1074_v45 }
0x10af   :  { %v1076_v4 = vmul.f32 %v1589_v44, %v1075_v46 }
0x10b1   :  { %v1077_v7 = vadd.f32 %v1589_v44, %v1076_v4 }
0x10b3   :  { %v1081_v11 = vsel %vm1080_vm8, %v1589_v44, %v1077_v7  ;;  %v2200_v44 = vld [vmem:[%s2248_s9] ss:$0 sm:$0xff]  ;;  %s1683_s9 = smov [#allocation6]  }
0x10b4   :  { %v1086_v14 = vsel %vm1083_vm9, %v1085_v12, %v1081_v11 }
0x10b5   :  { %v1089_v20 = vmul.f32 %v1086_v14, %v2116_v26 }
0x10c4   :  { %v1160_v8 = vpop.permute.xlu2 %1159 }
0x10c5   :  { %v1162_v37 = vmul.f32 %v1160_v8, %v1154_v36 }
0x10c7   :  { %1164 = vrot.lane.b32.xlu1 %v1162_v37, %s1681_s22 }
0x1109   :  { %v1092_v13 = vpop.permute.xlu1 %1091 }
0x110a   :  { %v1094_v15 = vmul.f32 %v1092_v13, %v1086_v14 }
0x110c   :  { %1096 = vrot.lane.b32.xlu0 %v1094_v15, %s1681_s22 }
0x1139   :  { %v1165_v17 = vpop.permute.xlu1 %1164 }
0x113a   :  { %v2144_v18 = vadd.f32 %v1165_v17, %v1157_v16 }
0x113c   :  { %1590 = vtanh.f32 %v2144_v18 }
0x1142   :  { %v1591_v19 = vpop.eup %1590 }
0x1143   :  { %1170 = vrot.lane.b32.xlu0 %v1591_v19, %s1680_s19 }
0x117e   :  { %v1097_v21 = vpop.permute.xlu0 %1096 }
0x117f   :  { %v2149_v23 = vadd.f32 %v1097_v21, %v1089_v20 }
0x1181   :  { %1592 = vtanh.f32 %v2149_v23 }
0x1187   :  { %v1593_v24 = vpop.eup %1592 }
0x1188   :  { %1102 = vrot.lane.b32.xlu2 %v1593_v24, %s1680_s19 }
0x11b5   :  { %v1171_v25 = vpop.permute.xlu0 %1170 }
0x11b6   :  { %v1173_v22 = vmul.f32 %v1171_v25, %v1154_v36 }
0x11b8   :  { %1175 = vrot.lane.b32.xlu1 %v1173_v22, %s1681_s22 }
0x11e2   :  { %v1103_v28 = vpop.permute.xlu2 %1102 }
0x11e3   :  { %v1105_v29 = vmul.f32 %v1103_v28, %v1086_v14 }
0x11e5   :  { %1178 = vrot.lane.b32.xlu2 %v1105_v29, %s1680_s19 }
0x122a   :  { %v1176_v27 = vpop.permute.xlu1 %1175 }
0x122b   :  { %1338 = vst.msk [vmem:[#allocation6] sm:$0xff] %vm151_vm1, %v1176_v27 }
0x123f   :  { %v1179_v26 = vpop.permute.xlu2 %1178 }
0x1240   :  { %v1181_v30 = vsel %vm151_vm1, %v1176_v27, %v1179_v26 }
0x1241   :  { %1445 = vmatmul.msk.f32.vlgmr.msrb.gmra.mxu0 %vm226_vm6, %v1181_v30 }
0x12be   :  { %v1202_v31 = vpop.f32.mrf.mxu0 }
0x12bf   :  { %v1203_v39 = vadd.f32 %v2137_v57, %v1202_v31  ;;  %v1256_v57 = vld [vmem:[%s2247_s8] sm:$0xff] }
0x12c1   :  { %1594 = vtanh.f32 %v1203_v39  ;;  %v1446_v43 = vmul.f32 -1.442695, %v1203_v39 }
0x12c3   :  { %1596 = vpow2.f32 %v1446_v43 }
0x12c7   :  { %v1595_v38 = vpop.eup %1594 }
0x12c8   :  { %1227 = vrot.lane.b32.xlu0 %v1595_v38, %s1680_s19 }
0x12c9   :  { %v1597_v33 = vpop.eup %1596 }
0x12ca   :  { %v1208_v52 = vadd.f32 1.0, %v1597_v33 }
0x12cc   :  { %1598 = vrcp.f32 %v1208_v52  ;;  %v1220_v50 = vand.u32 2147483648, %v1208_v52  ;;  %vm1214_vm10 = vweird.f32 %v1208_v52  ;;  %v1218_v61 = vand.u32 2147483647, %v1208_v52 }
0x12ce   :  { %v1221_v63 = vor.u32 1.1754944e-38, %v1220_v50  ;;  %vm1219_vm12 = vcmp.eq.f32.partialorder %v1218_v61, 8.507059e+37 }
0x12d0   :  { %971 = vrot.lane.b32.xlu0 %v2121_v32, %s1681_s22  ;;  %v1257_v32 = vld [vmem:[%s2247_s8 + $0x8] sm:$0xff] }
0x12d1   :  { %1460 = vmatpush.msrb.mxu3 %v1257_v32  ;;  %1302 = vmatpush.msra.mxu1 %v1257_v32 }
0x12d2   :  { %v1599_v40 = vpop.eup %1598  ;;  %1459 = vmatpush.msra.mxu2 %v1257_v32 }
0x12d3   :  { %v1210_v53 = vmul.f32 %v1599_v40, %v1208_v52  ;;  %1462 = vmatpush.msrb.mxu3 %v1256_v57  ;;  %1303 = vmatpush.msra.mxu1 %v1256_v57  ;;  %vm1215_vm6 = vweird.f32 %v1599_v40 }
0x12d4   :  { %1461 = vmatpush.msra.mxu2 %v1256_v57  ;;  %vm1216_vm11 = vmor %vm1214_vm10, %vm1215_vm6 }
0x12d5   :  { %v1211_v47 = vsub.f32 1.0, %v1210_v53 }
0x12d7   :  { %v1212_v59 = vmul.f32 %v1599_v40, %v1211_v47 }
0x12d8   :  { %1107 = vrot.lane.b32.xlu0 %v1105_v29, %s1681_s22 }
0x12d9   :  { %v1213_v60 = vadd.f32 %v1599_v40, %v1212_v59 }
0x12db   :  { %v1217_v62 = vsel %vm1216_vm11, %v1599_v40, %v1213_v60 }
0x12dc   :  { %v1222_v2 = vsel %vm1219_vm12, %v1221_v63, %v1217_v62 }
0x12dd   :  { %v1225_v8 = vmul.f32 %v1222_v2, %v2149_v23 }
0x133a   :  { %v1228_v0 = vpop.permute.xlu0 %1227 }
0x133b   :  { %v1230_v5 = vmul.f32 %v1228_v0, %v1222_v2 }
0x133d   :  { %1232 = vrot.lane.b32.xlu1 %v1230_v5, %s1681_s22 }
0x1342   :  { %v972_v6 = vpop.permute.xlu0 %971 }
0x1343   :  { %975 = vst.msk [vmem:[#allocation3 + $0x28] sm:$0xff] %vm151_vm1, %v972_v6 }
0x1345   :  { %292 = vrot.lane.b32.xlu1 %v1944_v51, %s1681_s22 }
0x134a   :  { %v1108_v1 = vpop.permute.xlu0 %1107  ;;  %v1253_v3 = vld [vmem:[#allocation3 + $0x28] sm:$0xff] }
0x134b   :  { %1111 = vst.msk [vmem:[#allocation3 + $0x30] sm:$0xff] %vm151_vm1, %v1108_v1  ;;  %1452 = vmatmul.msk.f32.vlgmr.msrb.gmra.mxu3 %vm151_vm1, %v1253_v3 }
0x134d   :  { %427 = vrot.lane.b32.xlu1 %v1984_v58, %s1681_s22 }
0x1352   :  { %v1254_v35 = vld [vmem:[#allocation3 + $0x30] sm:$0xff] }
0x1353   :  { %1453 = vmatmul.msk.f32.gmra.mxu3 %vm151_vm1, %v1254_v35 }
0x1355   :  { %563 = vrot.lane.b32.xlu1 %v2024_v34, %s1681_s22 }
0x13af   :  { %v1233_v36 = vpop.permute.xlu1 %1232 }
0x13b0   :  { %v1235_v37 = vadd.f32 %v1233_v36, %v1225_v8 }
0x13b2   :  { %1600 = vtanh.f32 %v1235_v37 }
0x13b7   :  { %v293_v51 = vpop.permute.xlu1 %292 }
0x13b8   :  { %v1601_v54 = vpop.eup %1600  ;;  %295 = vst.msk [vmem:[#allocation3] sm:$0xff] %vm151_vm1, %v293_v51 }
0x13b9   :  { %1238 = vrot.lane.b32.xlu2 %v1601_v54, %s1680_s19 }
0x13bf   :  { %v428_v41 = vpop.permute.xlu1 %427  ;;  %v1248_v42 = vld [vmem:[#allocation3] sm:$0xff] }
0x13c0   :  { %431 = vst.msk [vmem:[#allocation3 + $0x8] sm:$0xff] %vm151_vm1, %v428_v41  ;;  %1447 = vmatmul.msk.f32.vlgmr.msra.gmra.mxu1 %vm151_vm1, %v1248_v42 }
0x13c1   :  { %699 = vrot.lane.b32.xlu2 %v2056_v56, %s1681_s22 }
0x13c7   :  { %v564_v58 = vpop.permute.xlu1 %563  ;;  %v1249_v34 = vld [vmem:[#allocation3 + $0x8] sm:$0xff] }
0x13c8   :  { %567 = vst.msk [vmem:[#allocation3 + $0x10] sm:$0xff] %vm151_vm1, %v564_v58  ;;  %1448 = vmatmul.msk.f32.gmra.mxu1 %vm151_vm1, %v1249_v34 }
0x13c9   :  { %835 = vrot.lane.b32.xlu2 %v2088_v48, %s1681_s22 }
0x13ce   :  { %v1320_v45 = vpop.f32.mrf.mxu3 }
0x13cf   :  { %v1321_v46 = vadd.f32 %v2200_v44, %v1320_v45  ;;  %v1250_v4 = vld [vmem:[#allocation3 + $0x10] sm:$0xff] }
0x13d0   :  { %1449 = vmatmul.msk.f32.gmra.mxu1 %vm151_vm1, %v1250_v4 }
0x13d1   :  { %1335 = vst.msk [vmem:[#allocation4 + $0x28] sm:$0xff] %vm1329_vm13, %v1321_v46  ;;  %1342 = vrot.lane.b32.xlu2 %v2144_v18, %s1682_s2 }
0x13d6   :  { %v1323_v56 = vpop.f32.mrf.mxu3 }
0x13d7   :  { %v1324_v48 = vadd.f32 %v2200_v44, %v1323_v56 }
0x13d9   :  { %1336 = vst.msk [vmem:[#allocation4 + $0x30] sm:$0xff] %vm1329_vm13, %v1324_v48 }
0x1413   :  { %v1239_v7 = vpop.permute.xlu2 %1238 }
0x1414   :  { %v1241_v9 = vmul.f32 %v1239_v7, %v1222_v2 }
0x1416   :  { %1243 = vrot.lane.b32.xlu0 %v1241_v9, %s1681_s22  ;;  %s1369_s22 = sshll.u32 %s1683_s9, 4  ;;  %s1370_s22 = int_to_ptr.vmem [resolvable:$true] %s1369_s22 }
0x141b   :  { %v700_v10 = vpop.permute.xlu2 %699 }
0x141c   :  { %703 = vst.msk [vmem:[#allocation3 + $0x18] sm:$0xff] %vm151_vm1, %v700_v10 }
0x141e   :  { %1347 = vrot.lane.b32.xlu0 %v1235_v37, %s1682_s2 }
0x1423   :  { %v836_v11 = vpop.permute.xlu2 %835  ;;  %v1251_v12 = vld [vmem:[#allocation3 + $0x18] sm:$0xff] }
0x1424   :  { %839 = vst.msk [vmem:[#allocation3 + $0x20] sm:$0xff] %vm151_vm1, %v836_v11  ;;  %1450 = vmatmul.msk.f32.vlgmr.msra.gmra.mxu2 %vm151_vm1, %v1251_v12 }
0x142b   :  { %v1343_v13 = vpop.permute.xlu2 %1342  ;;  %v1252_v14 = vld [vmem:[#allocation3 + $0x20] sm:$0xff] }
0x142c   :  { %1345 = vst.msk [vmem:[#allocation8] sm:$0xff] %vm151_vm1, %v1343_v13  ;;  %1451 = vmatmul.msk.f32.gmra.mxu2 %vm151_vm1, %v1252_v14 }
0x143d   :  { %v1305_v15 = vpop.f32.mrf.mxu1 }
0x143e   :  { %v1306_v16 = vadd.f32 %v2200_v44, %v1305_v15 }
0x1440   :  { %1330 = vst.msk [vmem:[#allocation4] sm:$0xff] %vm1329_vm13, %v1306_v16 }
0x1445   :  { %v1308_v17 = vpop.f32.mrf.mxu1 }
0x1446   :  { %v1309_v18 = vadd.f32 %v2200_v44, %v1308_v17 }
0x1448   :  { %1331 = vst.msk [vmem:[#allocation4 + $0x8] sm:$0xff] %vm1329_vm13, %v1309_v18 }
0x144d   :  { %v1311_v19 = vpop.f32.mrf.mxu1 }
0x144e   :  { %v1312_v20 = vadd.f32 %v2200_v44, %v1311_v19 }
0x1450   :  { %1332 = vst.msk [vmem:[#allocation4 + $0x10] sm:$0xff] %vm1329_vm13, %v1312_v20 }
0x1488   :  { %v1244_v21 = vpop.permute.xlu0 %1243 }
0x1489   :  { %1247 = vst.msk [vmem:[#allocation3 + $0x38] sm:$0xff] %vm151_vm1, %v1244_v21 }
0x148a   :  { %1340 = vst.msk [vmem:[#allocation6 + $0x8] sm:$0xff] %vm151_vm1, %v1244_v21 }
0x148b   :  { %1377 = dma.vmem_to_hbm [thread:$0]  %s1370_s22, 256, %s1372_s29, [#allocation7], %s1684_s30, %s1684_s30, %s1685_s13  }
0x1490   :  { %v1348_v23 = vpop.permute.xlu0 %1347  ;;  %v1255_v24 = vld [vmem:[#allocation3 + $0x38] sm:$0xff] }
0x1491   :  { %1351 = vst.msk [vmem:[#allocation8 + $0x8] sm:$0xff] %vm151_vm1, %v1348_v23  ;;  %1454 = vmatmul.msk.f32.gmra.mxu3 %vm151_vm1, %v1255_v24 }
0x1492   :  { %1390 = dma.vmem_to_hbm [thread:$0]  %s1383_s15, 256, %s1385_s17, [#allocation7], %s1684_s30, %s1684_s30, %s1685_s13  }
0x14a7   :  { %v1314_v25 = vpop.f32.mrf.mxu2 }
0x14a8   :  { %v1315_v22 = vadd.f32 %v2200_v44, %v1314_v25 }
0x14aa   :  { %1333 = vst.msk [vmem:[#allocation4 + $0x18] sm:$0xff] %vm1329_vm13, %v1315_v22 }
0x14af   :  { %v1317_v28 = vpop.f32.mrf.mxu2 }
0x14b0   :  { %v1318_v29 = vadd.f32 %v2200_v44, %v1317_v28 }
0x14b2   :  { %1334 = vst.msk [vmem:[#allocation4 + $0x20] sm:$0xff] %vm1329_vm13, %v1318_v29 }
0x1514   :  { %v1326_v27 = vpop.f32.mrf.mxu3 }
0x1515   :  { %v1327_v26 = vadd.f32 %v2200_v44, %v1326_v27 }
0x1517   :  { %1337 = vst.msk [vmem:[#allocation4 + $0x38] sm:$0xff] %vm1329_vm13, %v1327_v26 }
0x1518   :  { %1364 = dma.vmem_to_hbm [thread:$0]  %s1357_s1, 1024, %s1359_s0, [#allocation5], %s1684_s30, %s1684_s30, %s1685_s13  }
0x1519   :  { %1676 = dma.done.wait [#allocation5], 1024  }
0x151a   :  { %1677 = vsyncadd [#allocation5], 4294966272 }
0x151b   :  { %1678 = dma.done.wait [#allocation7], 512  }
0x151c   :  { %1679 = vsyncadd [#allocation7], 4294966784 }
0x151d   :  { %1403 = vsyncpa [#allocation5], 1 }
0x151e   :  { %1404 = vsyncpa [#allocation7], 1 }

</bundles_post_ra>
